<compile_context>
chip_gen: v7x
topology: tpu7x:2x2x1
jax: 0.10.0
libtpu: 0.0.40
codegen_flags: <defaults>
</compile_context>

<pallas_src>
import itertools
import numpy as np
import jax
import jax.numpy as jnp
from jax import lax
from jax.experimental import pallas as pl
from jax.experimental.pallas import tpu as pltpu

N_CLUSTERS = 8
N_PARTITION = [3, 3, 2]
LAMBDA_THRESHOLD = 0.6
BASE_MASK_RATIO = [0.9, 0.45, 0.0]
KMEANS_ITERS = 20
MASK_TILE = 512          # tile width for the O(N^2) ranking kernel


# ----------------------------- matmul helpers (MXU) ---------------------------
def _mm_nt(a, b):
    # a [M, C], b [N, C] -> a @ b.T  [M, N]   (no explicit transpose)
    return lax.dot_general(a, b, (((1,), (1,)), ((), ())),
                           preferred_element_type=jnp.float32)


def _mm_tn(a, b):
    # a [C, M], b [C, N] -> a.T @ b  [M, N]   (no explicit transpose)
    return lax.dot_general(a, b, (((0,), (0,)), ((), ())),
                           preferred_element_type=jnp.float32)


def _argmin_onehot(d2):
    # one-hot of argmin along the last axis (first minimum wins, like np.argmin)
    k = d2.shape[-1]
    mind = jnp.min(d2, axis=-1, keepdims=True)
    col = lax.broadcasted_iota(jnp.int32, d2.shape, 1)
    cand = jnp.where(d2 <= mind, col, k)
    amin = jnp.min(cand, axis=-1, keepdims=True)
    return (col == amin).astype(jnp.float32)


# --------------------- fused k-means + stats + cosine kernel ------------------
def fused_kmeans_kernel(x_ref, c0_ref, oh_ref, cnt_ref, dsum_ref, dcnt_ref,
                        cos_ref):
    x = x_ref[...]                      # [N, D]  resident in VMEM for all iters
    cT0 = c0_ref[...]                   # [D, K]  centers transposed (K on lanes)

    def assign(cT):
        # squared-distance proxy (||x||^2 dropped): c2 broadcast is pure VPU.
        xc = jnp.dot(x, cT, preferred_element_type=jnp.float32)      # [N, K]
        c2 = jnp.sum(cT * cT, axis=0, keepdims=True)                 # [1, K]
        return _argmin_onehot(c2 - 2.0 * xc)                         # [N, K]

    def update(oh, cT):
        sums_t = _mm_tn(x, oh)                                       # [D, K]
        cnt = jnp.sum(oh, axis=0, keepdims=True)                     # [1, K]
        # empty cluster keeps its previous center (avoids NaN)
        return jnp.where(cnt > 0.0, sums_t / jnp.maximum(cnt, 1.0), cT)

    cT = lax.fori_loop(0, KMEANS_ITERS,
                       lambda _, c: update(assign(c), c), cT0)

    # Final labels, then centers = per-cluster mean of those labels
    # (matches get_cluster_centers in the reference module).
    oh = assign(cT)                                                  # [N, K]
    cT = update(oh, cT)                                              # [D, K]
    oh_ref[...] = oh
    cnt_ref[...] = jnp.sum(oh, axis=0, keepdims=True)                # [1, K]

    # intra-class discrimination statistics
    gc = _mm_nt(oh, cT)                                              # [N, D]
    diff = x - gc
    dist = jnp.sqrt(jnp.sum(diff * diff, axis=-1, keepdims=True))    # [N, 1]
    sel = (dist > LAMBDA_THRESHOLD).astype(jnp.float32)              # [N, 1]
    dsum_ref[...] = jnp.sum(oh * (sel * dist), axis=0, keepdims=True)   # [1, K]
    dcnt_ref[...] = jnp.sum(oh * sel, axis=0, keepdims=True)            # [1, K]

    # pairwise cosine distance between cluster centers (eps-guarded norm)
    nrm = jnp.sqrt(jnp.sum(cT * cT, axis=0, keepdims=True))          # [1, K]
    cn = cT / jnp.maximum(nrm, 1e-12)
    cos_ref[...] = 1.0 - _mm_tn(cn, cn)                              # [K, K]


def _vmem_spec():
    return pl.BlockSpec(memory_space=pltpu.MemorySpace.VMEM)


def fused_kmeans(seal, c0T):
    N, _ = seal.shape
    K = c0T.shape[1]
    return pl.pallas_call(
        fused_kmeans_kernel,
        out_shape=(jax.ShapeDtypeStruct((N, K), jnp.float32),    # onehot
                   jax.ShapeDtypeStruct((1, K), jnp.float32),    # counts
                   jax.ShapeDtypeStruct((1, K), jnp.float32),    # dist sums
                   jax.ShapeDtypeStruct((1, K), jnp.float32),    # dist counts
                   jax.ShapeDtypeStruct((K, K), jnp.float32)),   # cosine gram
        in_specs=[_vmem_spec(), _vmem_spec()],
        out_specs=(_vmem_spec(),) * 5,
    )(seal, c0T)


# --------------------------- rank-based masking kernel ------------------------
def mask_kernel(s_col_ref, s_row_ref, ohT_i_ref, ohT_j_ref, mcnt_ref,
                mask_ref, acc_ref):
    jt = pl.program_id(0)        # output (j) tile        -- "parallel"
    it = pl.program_id(1)        # comparison (i) tile    -- "arbitrary" reduction

    @pl.when(it == 0)
    def _():
        acc_ref[...] = jnp.zeros_like(acc_ref)

    s_i = s_col_ref[...]                                  # [TI, 1]
    s_j = s_row_ref[...]                                  # [1, TJ]
    ti, tj = s_i.shape[0], s_j.shape[1]
    gi = lax.broadcasted_iota(jnp.int32, (ti, tj), 0) + it * ti
    gj = lax.broadcasted_iota(jnp.int32, (ti, tj), 1) + jt * tj
    # "i precedes j" in the shared random ordering (ties broken by index)
    less = jnp.logical_or(
        s_i < s_j, jnp.logical_and(s_i == s_j, gi < gj)).astype(jnp.float32)
    # per-cluster partial rank:  acc[k, j] += sum_i onehotT[k, i] * less[i, j]
    # (no [N, N] same-cluster matrix is ever materialized; onehotT is the
    # lane-dense [K, TI] layout so the MXU load is a plain contraction)
    acc_ref[...] += jnp.dot(ohT_i_ref[...], less,
                            preferred_element_type=jnp.float32)      # [K, TJ]

    @pl.when(it == pl.num_programs(1) - 1)
    def _():
        ohT = ohT_j_ref[...]                                         # [K, TJ]
        rank = jnp.sum(acc_ref[...] * ohT, axis=0, keepdims=True)    # [1, TJ]
        thresh = jnp.sum(mcnt_ref[...] * ohT, axis=0, keepdims=True)  # [1, TJ]
        mask_ref[...] = (rank < thresh).astype(jnp.float32)


def rank_mask(scores_row, onehot, mask_counts_col, *, tile=MASK_TILE):
    # scores_row [1, N], onehot [N, K], mask_counts_col [K, 1] -> mask [1, N]
    N, K = onehot.shape
    onehot_t = onehot.T                        # [K, N], tiny XLA transpose (K=8)
    if N <= tile:
        npad, tj, ti = N, N, N
    else:
        npad = ((N + tile - 1) // tile) * tile
        tj = ti = tile
        if npad > N:
            scores_row = jnp.pad(scores_row, ((0, 0), (0, npad - N)))
            onehot_t = jnp.pad(onehot_t, ((0, 0), (0, npad - N)))
    scores_col = scores_row.reshape(npad, 1)   # free reshape at XLA level

    mask_row = pl.pallas_call(
        mask_kernel,
        out_shape=jax.ShapeDtypeStruct((1, npad), jnp.float32),
        grid_spec=pltpu.PrefetchScalarGridSpec(
            num_scalar_prefetch=0,
            grid=(npad // tj, npad // ti),
            in_specs=[
                pl.BlockSpec((ti, 1), lambda j, i: (i, 0)),     # comparison scores
                pl.BlockSpec((1, tj), lambda j, i: (0, j)),     # output-row scores
                pl.BlockSpec((K, ti), lambda j, i: (0, i)),     # onehot^T (comparison)
                pl.BlockSpec((K, tj), lambda j, i: (0, j)),     # onehot^T (output)
                pl.BlockSpec((K, 1), lambda j, i: (0, 0)),      # per-cluster counts
            ],
            out_specs=pl.BlockSpec((1, tj), lambda j, i: (0, j)),
            scratch_shapes=[pltpu.VMEM((K, tj), jnp.float32)],
        ),
        compiler_params=pltpu.CompilerParams(
            dimension_semantics=("parallel", "arbitrary")),
    )(scores_col, scores_row, onehot_t, onehot_t, mask_counts_col)
    return mask_row[:, :N]


# ------------------------------- jitted device glue ---------------------------
@jax.jit
def _stage1(seal):
    # TODO(synk): sklearn KMeans(random_state=0) has no Pallas equivalent;
    # replaced by deterministic Lloyd iterations (init = first K rows; duplicate
    # rows among the first K produce empty clusters that keep their center).
    c0T = jnp.transpose(seal[:N_CLUSTERS])                # [D, K]
    onehot, counts, dsum, dcnt, cosd = fused_kmeans(seal, c0T)
    d_intra = jnp.where(dcnt > 0.0, dsum / jnp.maximum(dcnt, 1.0), 0.0)  # [1, K]
    d_max = jnp.max(d_intra)
    r_c = jnp.where(d_max > 0.0, 1.0 - d_intra / d_max, 1.0)             # [1, K]
    return onehot, counts, r_c, cosd


@jax.jit
def _stage2(onehot, counts, r_c, base_ratio, key):
    N, K = onehot.shape
    r_k = base_ratio * r_c                                 # [1, K]
    mask_counts = jnp.floor(counts * r_k)                  # int() trunc (nonneg)
    # TODO(synk): torch.randperm per cluster replaced by ranking uniform random
    # scores within each cluster (same masked-count semantics, different RNG).
    scores = jax.random.uniform(key, (1, N), jnp.float32)
    mask = rank_mask(scores, onehot, mask_counts.reshape(K, 1))
    return mask[0]                                         # [N] float32


# --------------------------------- host glue -----------------------------------
def fastest_class_sampling(cosdist):
    # tiny combinatorial search over 8 clusters; runs on host numpy values
    B = list(range(N_CLUSTERS))
    partitions = []
    for t in range(len(N_PARTITION)):
        max_avg = 0.0
        selected = None
        for comb in itertools.combinations(B, N_PARTITION[t]):
            pairs = list(itertools.combinations(comb, 2))
            avg = sum(float(cosdist[i, j]) for i, j in pairs) / len(pairs)
            if avg > max_avg:
                max_avg = avg
                selected = comb
        if selected is None:   # degenerate case (all avg distances <= 0)
            selected = next(itertools.combinations(B, N_PARTITION[t]))
        partitions.append(selected)
        B = [b for b in B if b not in selected]
    return partitions


def i2mask_forward(seal, key):
    if seal.ndim != 2 or seal.shape[1] != 64:
        raise ValueError("Input tensor must be of shape [n, 64]")
    onehot, counts, r_c, cosd = _stage1(seal)
    partitions = fastest_class_sampling(np.asarray(cosd))   # single tiny host sync
    base = np.zeros((1, N_CLUSTERS), np.float32)
    for t, part in enumerate(partitions):
        for ci in part:
            base[0, ci] = BASE_MASK_RATIO[t]
    return _stage2(onehot, counts, r_c, jnp.asarray(base), key)


if __name__ == "__main__":
    key = jax.random.PRNGKey(0)
    k_data, k_mask = jax.random.split(key)
    seal = jax.random.normal(k_data, (64, 64), jnp.float32)   # [n, 64]
    voxel_mask = i2mask_forward(seal, k_mask)
    voxel_mask = jax.block_until_ready(voxel_mask)
    assert voxel_mask.shape == (64,)
    assert voxel_mask.dtype == jnp.float32
    assert bool(jnp.all((voxel_mask == 0.0) | (voxel_mask == 1.0)))
    print("KERNEL_OK")
</pallas_src>

<mosaic_0001>
module attributes {stable_mosaic.version = 11 : i64} {
  func.func @fused_kmeans_kernel(%arg0: memref<64x64xf32, #tpu.memory_space<vmem>>, %arg1: memref<64x8xf32, #tpu.memory_space<vmem>>, %arg2: memref<64x8xf32, #tpu.memory_space<vmem>>, %arg3: memref<1x8xf32, #tpu.memory_space<vmem>>, %arg4: memref<1x8xf32, #tpu.memory_space<vmem>>, %arg5: memref<1x8xf32, #tpu.memory_space<vmem>>, %arg6: memref<8x8xf32, #tpu.memory_space<vmem>>) attributes {dimension_semantics = [], scalar_prefetch = 0 : i64, scratch_operands = 0 : i64, tpu.core_type = #tpu.core_type<tc>} {
    %c0 = arith.constant 0 : index
    %c0_0 = arith.constant 0 : index
    %0 = vector.load %arg0[%c0, %c0_0] : memref<64x64xf32, #tpu.memory_space<vmem>>, vector<64x64xf32>
    %c0_1 = arith.constant 0 : index
    %c0_2 = arith.constant 0 : index
    %1 = vector.load %arg1[%c0_1, %c0_2] : memref<64x8xf32, #tpu.memory_space<vmem>>, vector<64x8xf32>
    %c0_i32 = arith.constant 0 : i32
    %c20_i32 = arith.constant 20 : i32
    %2 = arith.addi %c0_i32, %c20_i32 : i32
    %c1_i32 = arith.constant 1 : i32
    %3 = scf.for %arg7 = %c0_i32 to %2 step %c1_i32 iter_args(%arg8 = %1) -> (vector<64x8xf32>)  : i32 {
      %cst_31 = arith.constant dense<0.000000e+00> : vector<64x8xf32>
      %74 = tpu.matmul %0, %arg8, %cst_31 {dimension_numbers = #tpu.dot_dimension_numbers<[1], [0], [0], [1], [0, 0, 1, 1], [], []>} : vector<64x64xf32>, vector<64x8xf32>, vector<64x8xf32> -> vector<64x8xf32>
      %75 = arith.mulf %arg8, %arg8 : vector<64x8xf32>
      %cst_32 = arith.constant dense<0.000000e+00> : vector<8xf32>
      %76 = vector.multi_reduction <add>, %75, %cst_32 [0] : vector<64x8xf32> to vector<8xf32>
      %77 = vector.shape_cast %76 : vector<8xf32> to vector<1x8xf32>
      %cst_33 = arith.constant 2.000000e+00 : f32
      %78 = vector.broadcast %cst_33 : f32 to vector<64x8xf32>
      %79 = arith.mulf %78, %74 : vector<64x8xf32>
      %80 = vector.broadcast %77 : vector<1x8xf32> to vector<64x8xf32>
      %81 = arith.subf %80, %79 : vector<64x8xf32>
      %cst_34 = arith.constant dense<0x7F800000> : vector<64xf32>
      %82 = vector.multi_reduction <minimumf>, %81, %cst_34 [1] : vector<64x8xf32> to vector<64xf32>
      %83 = vector.shape_cast %82 : vector<64xf32> to vector<64x1xf32>
      %84 = tpu.iota {dimensions = array<i32: 1>} : vector<64x8xi32>
      %85 = vector.broadcast %83 : vector<64x1xf32> to vector<64x8xf32>
      %86 = arith.cmpf ole, %81, %85 : vector<64x8xf32>
      %c8_i32_35 = arith.constant 8 : i32
      %87 = vector.broadcast %c8_i32_35 : i32 to vector<64x8xi32>
      %88 = arith.select %86, %84, %87 : vector<64x8xi1>, vector<64x8xi32>
      %cst_36 = arith.constant dense<2147483647> : vector<64xi32>
      %89 = vector.multi_reduction <minsi>, %88, %cst_36 [1] : vector<64x8xi32> to vector<64xi32>
      %90 = vector.shape_cast %89 : vector<64xi32> to vector<64x1xi32>
      %91 = vector.broadcast %90 : vector<64x1xi32> to vector<64x8xi32>
      %92 = arith.cmpi eq, %84, %91 : vector<64x8xi32>
      %93 = arith.extui %92 : vector<64x8xi1> to vector<64x8xi32>
      %94 = arith.sitofp %93 : vector<64x8xi32> to vector<64x8xf32>
      %cst_37 = arith.constant dense<0.000000e+00> : vector<64x8xf32>
      %95 = tpu.matmul %0, %94, %cst_37 {dimension_numbers = #tpu.dot_dimension_numbers<[0], [0], [1], [1], [0, 1, 1, 1], [], []>} : vector<64x64xf32>, vector<64x8xf32>, vector<64x8xf32> -> vector<64x8xf32>
      %cst_38 = arith.constant dense<0.000000e+00> : vector<8xf32>
      %96 = vector.multi_reduction <add>, %94, %cst_38 [0] : vector<64x8xf32> to vector<8xf32>
      %97 = vector.shape_cast %96 : vector<8xf32> to vector<1x8xf32>
      %cst_39 = arith.constant 0.000000e+00 : f32
      %98 = vector.broadcast %cst_39 : f32 to vector<1x8xf32>
      %99 = arith.cmpf ogt, %97, %98 : vector<1x8xf32>
      %cst_40 = arith.constant 1.000000e+00 : f32
      %100 = vector.broadcast %cst_40 : f32 to vector<1x8xf32>
      %101 = arith.maximumf %97, %100 : vector<1x8xf32>
      %102 = vector.broadcast %101 : vector<1x8xf32> to vector<64x8xf32>
      %103 = arith.divf %95, %102 : vector<64x8xf32>
      %104 = vector.shape_cast %99 : vector<1x8xi1> to vector<1x8xi1>
      %105 = vector.broadcast %104 : vector<1x8xi1> to vector<64x8xi1>
      %106 = arith.select %105, %103, %arg8 : vector<64x8xi1>, vector<64x8xf32>
      scf.yield %106 : vector<64x8xf32>
    }
    %cst = arith.constant dense<0.000000e+00> : vector<64x8xf32>
    %4 = tpu.matmul %0, %3, %cst {dimension_numbers = #tpu.dot_dimension_numbers<[1], [0], [0], [1], [0, 0, 1, 1], [], []>} : vector<64x64xf32>, vector<64x8xf32>, vector<64x8xf32> -> vector<64x8xf32>
    %5 = arith.mulf %3, %3 : vector<64x8xf32>
    %cst_3 = arith.constant dense<0.000000e+00> : vector<8xf32>
    %6 = vector.multi_reduction <add>, %5, %cst_3 [0] : vector<64x8xf32> to vector<8xf32>
    %7 = vector.shape_cast %6 : vector<8xf32> to vector<1x8xf32>
    %cst_4 = arith.constant 2.000000e+00 : f32
    %8 = vector.broadcast %cst_4 : f32 to vector<64x8xf32>
    %9 = arith.mulf %8, %4 : vector<64x8xf32>
    %10 = vector.broadcast %7 : vector<1x8xf32> to vector<64x8xf32>
    %11 = arith.subf %10, %9 : vector<64x8xf32>
    %cst_5 = arith.constant dense<0x7F800000> : vector<64xf32>
    %12 = vector.multi_reduction <minimumf>, %11, %cst_5 [1] : vector<64x8xf32> to vector<64xf32>
    %13 = vector.shape_cast %12 : vector<64xf32> to vector<64x1xf32>
    %14 = tpu.iota {dimensions = array<i32: 1>} : vector<64x8xi32>
    %15 = vector.broadcast %13 : vector<64x1xf32> to vector<64x8xf32>
    %16 = arith.cmpf ole, %11, %15 : vector<64x8xf32>
    %c8_i32 = arith.constant 8 : i32
    %17 = vector.broadcast %c8_i32 : i32 to vector<64x8xi32>
    %18 = arith.select %16, %14, %17 : vector<64x8xi1>, vector<64x8xi32>
    %cst_6 = arith.constant dense<2147483647> : vector<64xi32>
    %19 = vector.multi_reduction <minsi>, %18, %cst_6 [1] : vector<64x8xi32> to vector<64xi32>
    %20 = vector.shape_cast %19 : vector<64xi32> to vector<64x1xi32>
    %21 = vector.broadcast %20 : vector<64x1xi32> to vector<64x8xi32>
    %22 = arith.cmpi eq, %14, %21 : vector<64x8xi32>
    %23 = arith.extui %22 : vector<64x8xi1> to vector<64x8xi32>
    %24 = arith.sitofp %23 : vector<64x8xi32> to vector<64x8xf32>
    %cst_7 = arith.constant dense<0.000000e+00> : vector<64x8xf32>
    %25 = tpu.matmul %0, %24, %cst_7 {dimension_numbers = #tpu.dot_dimension_numbers<[0], [0], [1], [1], [0, 1, 1, 1], [], []>} : vector<64x64xf32>, vector<64x8xf32>, vector<64x8xf32> -> vector<64x8xf32>
    %cst_8 = arith.constant dense<0.000000e+00> : vector<8xf32>
    %26 = vector.multi_reduction <add>, %24, %cst_8 [0] : vector<64x8xf32> to vector<8xf32>
    %27 = vector.shape_cast %26 : vector<8xf32> to vector<1x8xf32>
    %cst_9 = arith.constant 0.000000e+00 : f32
    %28 = vector.broadcast %cst_9 : f32 to vector<1x8xf32>
    %29 = arith.cmpf ogt, %27, %28 : vector<1x8xf32>
    %cst_10 = arith.constant 1.000000e+00 : f32
    %30 = vector.broadcast %cst_10 : f32 to vector<1x8xf32>
    %31 = arith.maximumf %27, %30 : vector<1x8xf32>
    %32 = vector.broadcast %31 : vector<1x8xf32> to vector<64x8xf32>
    %33 = arith.divf %25, %32 : vector<64x8xf32>
    %34 = vector.shape_cast %29 : vector<1x8xi1> to vector<1x8xi1>
    %35 = vector.broadcast %34 : vector<1x8xi1> to vector<64x8xi1>
    %36 = arith.select %35, %33, %3 : vector<64x8xi1>, vector<64x8xf32>
    %c0_11 = arith.constant 0 : index
    %c0_12 = arith.constant 0 : index
    %37 = vector.load %arg2[%c0_11, %c0_12] : memref<64x8xf32, #tpu.memory_space<vmem>>, vector<64x8xf32>
    tpu.vector_store %arg2[%c0_11, %c0_12], %24 {strides = array<i32>} : memref<64x8xf32, #tpu.memory_space<vmem>>, vector<64x8xf32>,
    %cst_13 = arith.constant dense<0.000000e+00> : vector<8xf32>
    %38 = vector.multi_reduction <add>, %24, %cst_13 [0] : vector<64x8xf32> to vector<8xf32>
    %39 = vector.shape_cast %38 : vector<8xf32> to vector<1x8xf32>
    %c0_14 = arith.constant 0 : index
    %c0_15 = arith.constant 0 : index
    %40 = vector.load %arg3[%c0_14, %c0_15] : memref<1x8xf32, #tpu.memory_space<vmem>>, vector<1x8xf32>
    tpu.vector_store %arg3[%c0_14, %c0_15], %39 {strides = array<i32>} : memref<1x8xf32, #tpu.memory_space<vmem>>, vector<1x8xf32>,
    %cst_16 = arith.constant dense<0.000000e+00> : vector<64x64xf32>
    %41 = tpu.matmul %24, %36, %cst_16 {dimension_numbers = #tpu.dot_dimension_numbers<[1], [1], [0], [0], [0, 0, 1, 0], [], []>} : vector<64x8xf32>, vector<64x8xf32>, vector<64x64xf32> -> vector<64x64xf32>
    %42 = arith.subf %0, %41 : vector<64x64xf32>
    %43 = arith.mulf %42, %42 : vector<64x64xf32>
    %cst_17 = arith.constant dense<0.000000e+00> : vector<64xf32>
    %44 = vector.multi_reduction <add>, %43, %cst_17 [1] : vector<64x64xf32> to vector<64xf32>
    %45 = vector.shape_cast %44 : vector<64xf32> to vector<64x1xf32>
    %46 = math.sqrt %45 : vector<64x1xf32>
    %cst_18 = arith.constant 6.000000e-01 : f32
    %47 = vector.broadcast %cst_18 : f32 to vector<64x1xf32>
    %48 = arith.cmpf ogt, %46, %47 : vector<64x1xf32>
    %49 = arith.extui %48 : vector<64x1xi1> to vector<64x1xi32>
    %50 = arith.sitofp %49 : vector<64x1xi32> to vector<64x1xf32>
    %51 = arith.mulf %50, %46 : vector<64x1xf32>
    %52 = vector.broadcast %51 : vector<64x1xf32> to vector<64x8xf32>
    %53 = arith.mulf %24, %52 : vector<64x8xf32>
    %cst_19 = arith.constant dense<0.000000e+00> : vector<8xf32>
    %54 = vector.multi_reduction <add>, %53, %cst_19 [0] : vector<64x8xf32> to vector<8xf32>
    %55 = vector.shape_cast %54 : vector<8xf32> to vector<1x8xf32>
    %c0_20 = arith.constant 0 : index
    %c0_21 = arith.constant 0 : index
    %56 = vector.load %arg4[%c0_20, %c0_21] : memref<1x8xf32, #tpu.memory_space<vmem>>, vector<1x8xf32>
    tpu.vector_store %arg4[%c0_20, %c0_21], %55 {strides = array<i32>} : memref<1x8xf32, #tpu.memory_space<vmem>>, vector<1x8xf32>,
    %57 = vector.broadcast %50 : vector<64x1xf32> to vector<64x8xf32>
    %58 = arith.mulf %24, %57 : vector<64x8xf32>
    %cst_22 = arith.constant dense<0.000000e+00> : vector<8xf32>
    %59 = vector.multi_reduction <add>, %58, %cst_22 [0] : vector<64x8xf32> to vector<8xf32>
    %60 = vector.shape_cast %59 : vector<8xf32> to vector<1x8xf32>
    %c0_23 = arith.constant 0 : index
    %c0_24 = arith.constant 0 : index
    %61 = vector.load %arg5[%c0_23, %c0_24] : memref<1x8xf32, #tpu.memory_space<vmem>>, vector<1x8xf32>
    tpu.vector_store %arg5[%c0_23, %c0_24], %60 {strides = array<i32>} : memref<1x8xf32, #tpu.memory_space<vmem>>, vector<1x8xf32>,
    %62 = arith.mulf %36, %36 : vector<64x8xf32>
    %cst_25 = arith.constant dense<0.000000e+00> : vector<8xf32>
    %63 = vector.multi_reduction <add>, %62, %cst_25 [0] : vector<64x8xf32> to vector<8xf32>
    %64 = vector.shape_cast %63 : vector<8xf32> to vector<1x8xf32>
    %65 = math.sqrt %64 : vector<1x8xf32>
    %cst_26 = arith.constant 9.99999996E-13 : f32
    %66 = vector.broadcast %cst_26 : f32 to vector<1x8xf32>
    %67 = arith.maximumf %65, %66 : vector<1x8xf32>
    %68 = vector.broadcast %67 : vector<1x8xf32> to vector<64x8xf32>
    %69 = arith.divf %36, %68 : vector<64x8xf32>
    %cst_27 = arith.constant dense<0.000000e+00> : vector<8x8xf32>
    %70 = tpu.matmul %69, %69, %cst_27 {dimension_numbers = #tpu.dot_dimension_numbers<[0], [0], [1], [1], [0, 1, 1, 1], [], []>} : vector<64x8xf32>, vector<64x8xf32>, vector<8x8xf32> -> vector<8x8xf32>
    %cst_28 = arith.constant 1.000000e+00 : f32
    %71 = vector.broadcast %cst_28 : f32 to vector<8x8xf32>
    %72 = arith.subf %71, %70 : vector<8x8xf32>
    %c0_29 = arith.constant 0 : index
    %c0_30 = arith.constant 0 : index
    %73 = vector.load %arg6[%c0_29, %c0_30] : memref<8x8xf32, #tpu.memory_space<vmem>>, vector<8x8xf32>
    tpu.vector_store %arg6[%c0_29, %c0_30], %72 {strides = array<i32>} : memref<8x8xf32, #tpu.memory_space<vmem>>, vector<8x8xf32>,
    return
  }
}

</mosaic_0001>

<bundles_post_ra>
// kernel: _stage1.1
= control target key start
LH: loop header
LB: loop body
LE: loop exit
PB: predicated region body
PF: predicated region fallthrough
CT: control target
= control target key end

     0   :  { %12 = vsyncpa [#allocation3], 0  ;;  %s3194_s0 = inlined_call_operand.vmem [shape: f32[64,64], index: 0, kind: input, shape index: {}]   ;;  %s3195_s1 = inlined_call_operand.vmem [shape: f32[64,8], index: 1, kind: input, shape index: {}]   ;;  %s3196_s2 = inlined_call_operand.vmem [shape: f32[64,8], index: 2, kind: output, shape index: {0}]   ;;  %s3197_s3 = inlined_call_operand.hbm [shape: f32[1,8], index: 3, kind: output, shape index: {1}]   ;;  %s3198_s4 = inlined_call_operand.vmem [shape: f32[1,8], index: 4, kind: output, shape index: {2}]   ;;  %s3199_s5 = inlined_call_operand.vmem [shape: f32[1,8], index: 5, kind: output, shape index: {3}]   ;;  %s3200_s6 = inlined_call_operand.hbm [shape: f32[8,8], index: 6, kind: output, shape index: {4}]  }
   0x1   :  { %13 = vsyncpa [#allocation5], 0  ;;  %v2458_v0 = vld [vmem:[%s3194_s0] sm:$0xff]  ;;  %v2463_v1 = vld [vmem:[%s3194_s0 + $0x8] sm:$0xff]  ;;  %s2535_s28 = smov 0  }
   0x2   :  { %v2468_v2 = vld [vmem:[%s3194_s0 + $0x10] sm:$0xff]  ;;  %v2473_v3 = vld [vmem:[%s3194_s0 + $0x18] sm:$0xff]  ;;  %v2478_v4 = vld [vmem:[%s3194_s0 + $0x20] sm:$0xff] }
   0x3   :  { %v2483_v5 = vld [vmem:[%s3194_s0 + $0x28] sm:$0xff]  ;;  %v2488_v6 = vld [vmem:[%s3194_s0 + $0x30] sm:$0xff]  ;;  %v2493_v7 = vld [vmem:[%s3194_s0 + $0x38] sm:$0xff] }
   0x4   :  { %v26_v8 = vld [vmem:[%s3195_s1] sm:$0xff]   ;;  %v27_v9 = vld [vmem:[%s3195_s1 + $0x8] sm:$0xff]   ;;  %v28_v10 = vld [vmem:[%s3195_s1 + $0x10] sm:$0xff]  }
   0x5   :  { %v29_v11 = vld [vmem:[%s3195_s1 + $0x18] sm:$0xff]   ;;  %v30_v12 = vld [vmem:[%s3195_s1 + $0x20] sm:$0xff]   ;;  %v31_v13 = vld [vmem:[%s3195_s1 + $0x28] sm:$0xff]  }
   0x6   :  { %v32_v14 = vld [vmem:[%s3195_s1 + $0x30] sm:$0xff]   ;;  %v33_v15 = vld [vmem:[%s3195_s1 + $0x38] sm:$0xff]  }
   0x7 LB: > { %v2088_v16 = vpack.c.bf16 %v2402_v9, %v2406_v8  ;;  %v2092_v17 = vpack.c.bf16 %v2394_v11, %v2398_v10  ;;  %v2096_v18 = vpack.c.bf16 %v2386_v13, %v2390_v12  ;;  %vm48_vm0 = vcmask 523264   ;;  %s39_s28 = sadd.s32 1, %s2410_s28   ;;  %s2410_s28 = sphi %s2535_s28, %s39_s28   ;;  %v2406_v8 = vphi %v26_v8, %v3216_v8   ;;  %v2402_v9 = vphi %v27_v9, %v3215_v9   ;;  %v2398_v10 = vphi %v28_v10, %v3214_v10   ;;  %v2394_v11 = vphi %v29_v11, %v3213_v11   ;;  %v2390_v12 = vphi %v30_v12, %v3212_v12   ;;  %v2386_v13 = vphi %v31_v13, %v3211_v13   ;;  %v2382_v14 = vphi %v32_v14, %v3210_v14   ;;  %v2378_v15 = vphi %v33_v15, %v3209_v15  }
   0x8   : > { %1945 = vmatprep.mubr.msk.f32.mxu0 %vm48_vm0, %v2458_v0  ;;  %v2100_v19 = vpack.c.bf16 %v2378_v15, %v2382_v14  ;;  %v178_v20 = vmul.f32 %v2406_v8, %v2406_v8  ;;  %v179_v21 = vmul.f32 %v2402_v9, %v2402_v9  ;;  %vm186_vm1 = vcmask 64512   ;;  %p36_p0 = scmp.ge.s32.totalorder %s39_s28, 20  }
   0x9   : > { %2089 = vmatprep.subr.bf16.mxu0 %v2088_v16  ;;  %v180_v24 = vmul.f32 %v2398_v10, %v2398_v10  ;;  %v181_v26 = vmul.f32 %v2394_v11, %v2394_v11  ;;  %v182_v30 = vmul.f32 %v2390_v12, %v2390_v12  ;;  %v183_v32 = vmul.f32 %v2386_v13, %v2386_v13 }
   0xa   : > { %2091 = vmatpush3.bf16.msra.mxu0 %v2088_v16  ;;  %v187_v22 = vsel %vm186_vm1, %v178_v20, 0.0  ;;  %v188_v23 = vsel %vm186_vm1, %v179_v21, 0.0  ;;  %v184_v36 = vmul.f32 %v2382_v14, %v2382_v14  ;;  %v185_v38 = vmul.f32 %v2378_v15, %v2378_v15 }
   0xb   : > { %2093 = vmatprep.subr.bf16.mxu0 %v2092_v17  ;;  %v189_v25 = vadd.f32 %v188_v23, %v187_v22  ;;  %v190_v27 = vsel %vm186_vm1, %v180_v24, 0.0  ;;  %v192_v29 = vsel %vm186_vm1, %v181_v26, 0.0  ;;  %v194_v33 = vsel %vm186_vm1, %v182_v30, 0.0 }
   0xc   : > { %v196_v35 = vsel %vm186_vm1, %v183_v32, 0.0  ;;  %v198_v39 = vsel %vm186_vm1, %v184_v36, 0.0  ;;  %v200_v41 = vsel %vm186_vm1, %v185_v38, 0.0 }
   0xd   : > { %v191_v28 = vadd.f32 %v190_v27, %v189_v25 }
   0xe   : > { %2095 = vmatpush3.bf16.msra.mxu0 %v2092_v17 }
   0xf   : > { %2097 = vmatprep.subr.bf16.mxu0 %v2096_v18  ;;  %v193_v31 = vadd.f32 %v192_v29, %v191_v28 }
  0x11   : > { %v195_v34 = vadd.f32 %v194_v33, %v193_v31  ;;  %v248_v33 = vlaneseq }
  0x12   : > { %2099 = vmatpush3.bf16.msra.mxu0 %v2096_v18 }
  0x13   : > { %2101 = vmatprep.subr.bf16.mxu0 %v2100_v19  ;;  %v197_v37 = vadd.f32 %v196_v35, %v195_v34  ;;  %v2620_v34 = vand.u32 127, %v248_v33 }
  0x15   : > { %v199_v40 = vadd.f32 %v198_v39, %v197_v37 }
  0x16   : > { %2103 = vmatpush3.bf16.msra.mxu0 %v2100_v19 }
  0x17   : > { %v201_v42 = vadd.f32 %v200_v41, %v199_v40 }
  0x19   : > { %1946 = vmatmul.mubr.msk.f32.vlgmr.msra.gmra.mrb[0].mxu0 %vm48_vm0, %v2463_v1  ;;  %v202_v43 = vrot.slane %v201_v42, 4 }
  0x1a   : > { %1948 = vmatprep.mubr.msk.f32.mxu0 %vm48_vm0, %v2468_v2 }
  0x1b   : > { %v203_v44 = vadd.f32 %v202_v43, %v201_v42 }
  0x1d   : > { %1949 = vmatmul.mubr.msk.f32.gmra.mrb[2].mxu0 %vm48_vm0, %v2473_v3  ;;  %v204_v45 = vrot.slane %v203_v44, 2 }
  0x1e   : > { %1951 = vmatprep.mubr.msk.f32.mxu0 %vm48_vm0, %v2478_v4 }
  0x1f   : > { %v205_v46 = vadd.f32 %v204_v45, %v203_v44 }
  0x21   : > { %1952 = vmatmul.mubr.msk.f32.gmra.mrb[4].mxu0 %vm48_vm0, %v2483_v5  ;;  %v206_v47 = vrot.slane %v205_v46, 1 }
  0x22   : > { %1954 = vmatprep.mubr.msk.f32.mxu0 %vm48_vm0, %v2488_v6 }
  0x23   : > { %v207_v48 = vadd.f32 %v206_v47, %v205_v46 }
  0x25   : > { %1955 = vmatmul.mubr.msk.f32.gmra.mrb[6].mxu0 %vm48_vm0, %v2493_v7 }
  0xec   : > { %v1947_v49 = vpop.f32.mrb[0].mxu0 }
  0xed   : > { %v139_v50 = vpop.f32.mrb[1].mxu0  ;;  %v209_v51 = vmul.f32 2.0, %v1947_v49 }
  0xee   : > { %v208_v52 = vmul.f32 2.0, %v139_v50 }
  0xef   : > { %v217_v59 = vsub.f32 %v207_v48, %v209_v51 }
  0xf0   : > { %v1950_v53 = vpop.f32.mrb[2].mxu0  ;;  %v216_v54 = vsub.f32 %v207_v48, %v208_v52 }
  0xf1   : > { %v211_v55 = vmul.f32 2.0, %v1950_v53  ;;  %v149_v56 = vpop.f32.mrb[3].mxu0  ;;  %v227_v19 = vsel %vm186_vm1, %v217_v59, inf }
  0xf2   : > { %v210_v57 = vmul.f32 2.0, %v149_v56  ;;  %v224_v58 = vsel %vm186_vm1, %v216_v54, inf }
  0xf3   : > { %225 = vmin.xlane.f32.xlu0 %v224_v58  ;;  %v219_v60 = vsub.f32 %v207_v48, %v211_v55 }
  0xf4   : > { %v1953_v61 = vpop.f32.mrb[4].mxu0  ;;  %v218_v17 = vsub.f32 %v207_v48, %v210_v57 }
  0xf5   : > { %v213_v62 = vmul.f32 2.0, %v1953_v61  ;;  %v159_v63 = vpop.f32.mrb[5].mxu0  ;;  %v233_v16 = vsel %vm186_vm1, %v219_v60, inf }
  0xf6   : > { %v212_v18 = vmul.f32 2.0, %v159_v63  ;;  %234 = vmin.xlane.f32.xlu1 %v233_v16  ;;  %v230_v25 = vsel %vm186_vm1, %v218_v17, inf }
  0xf7   : > { %228 = vmin.xlane.f32.xlu0 %v227_v19  ;;  %v221_v20 = vsub.f32 %v207_v48, %v213_v62 }
  0xf8   : > { %v1956_v21 = vpop.f32.mrb[6].mxu0  ;;  %v220_v22 = vsub.f32 %v207_v48, %v212_v18 }
  0xf9   : > { %v215_v23 = vmul.f32 2.0, %v1956_v21  ;;  %v169_v24 = vpop.f32.mrb[7].mxu0  ;;  %v239_v28 = vsel %vm186_vm1, %v221_v20, inf }
  0xfa   : > { %v214_v26 = vmul.f32 2.0, %v169_v24  ;;  %231 = vmin.xlane.f32.xlu1 %v230_v25  ;;  %v236_v27 = vsel %vm186_vm1, %v220_v22, inf }
  0xfb   : > { %237 = vmin.xlane.f32.xlu0 %v236_v27  ;;  %v223_v29 = vsub.f32 %v207_v48, %v215_v23 }
  0xfc   : > { %v222_v30 = vsub.f32 %v207_v48, %v214_v26 }
  0xfd   : > { %v245_v32 = vsel %vm186_vm1, %v223_v29, inf }
  0xfe   : > { %240 = vmin.xlane.f32.xlu1 %v239_v28  ;;  %v242_v31 = vsel %vm186_vm1, %v222_v30, inf }
  0xff   : > { %243 = vmin.xlane.f32.xlu0 %v242_v31 }
 0x102   : > { %246 = vmin.xlane.f32.xlu1 %v245_v32 }
 0x180   : > { %v226_v35 = vpop.xlane.xlu0 %225 }
 0x181   : > { %vm250_vm2 = vcmp.le.f32.partialorder %v216_v54, %v226_v35 }
 0x182   : > { %v258_v36 = vsel %vm250_vm2, %v2620_v34, 8 }
 0x183   : > { %v266_v37 = vsel %vm186_vm1, %v258_v36, 2147483647  ;;  %v235_v38 = vpop.xlane.xlu1 %234 }
 0x184   : > { %vm253_vm3 = vcmp.le.f32.partialorder %v219_v60, %v235_v38  ;;  %v229_v39 = vpop.xlane.xlu0 %228  ;;  %v268_v40 = vshra.s32 %v266_v37, 16  ;;  %v267_v27 = vand.u32 65535, %v266_v37 }
 0x185   : > { %v261_v41 = vsel %vm253_vm3, %v2620_v34, 8  ;;  %vm251_vm4 = vcmp.le.f32.partialorder %v217_v59, %v229_v39 }
 0x186   : > { %v259_v42 = vsel %vm251_vm4, %v2620_v34, 8  ;;  %v270_v43 = vcvt.s32.f32 %v268_v40  ;;  %v2627_v44 = vsel %vm186_vm1, %v261_v41, 2147483647 }
 0x187   : > { %v281_v45 = vsel %vm186_vm1, %v259_v42, 2147483647  ;;  %v232_v46 = vpop.xlane.xlu1 %231  ;;  %v313_v53 = vshra.s32 %v2627_v44, 16  ;;  %v312_v36 = vand.u32 65535, %v2627_v44 }
 0x188   : > { %vm252_vm5 = vcmp.le.f32.partialorder %v218_v17, %v232_v46  ;;  %v238_v47 = vpop.xlane.xlu0 %237  ;;  %271 = vmin.xlane.f32.xlu0 %v270_v43  ;;  %v283_v48 = vshra.s32 %v281_v45, 16  ;;  %v282_v31 = vand.u32 65535, %v281_v45 }
 0x189   : > { %v260_v49 = vsel %vm252_vm5, %v2620_v34, 8  ;;  %vm254_vm6 = vcmp.le.f32.partialorder %v220_v22, %v238_v47  ;;  %v315_v63 = vcvt.s32.f32 %v313_v53  ;;  %v314_v37 = vcvt.s32.f32 %v312_v36 }
 0x18a   : > { %v296_v50 = vsel %vm186_vm1, %v260_v49, 2147483647  ;;  %v262_v51 = vsel %vm254_vm6, %v2620_v34, 8  ;;  %v285_v52 = vcvt.s32.f32 %v283_v48  ;;  %v284_v35 = vcvt.s32.f32 %v282_v31 }
 0x18b   : > { %v326_v54 = vsel %vm186_vm1, %v262_v51, 2147483647  ;;  %v241_v55 = vpop.xlane.xlu1 %240  ;;  %v298_v56 = vshra.s32 %v296_v50, 16  ;;  %v297_v32 = vand.u32 65535, %v296_v50  ;;  %v2412_v31 = vmov 0.0  }
 0x18c   : > { %vm255_vm7 = vcmp.le.f32.partialorder %v221_v20, %v241_v55  ;;  %286 = vmin.xlane.f32.xlu1 %v285_v52  ;;  %v244_v57 = vpop.xlane.xlu0 %243  ;;  %v328_v60 = vshra.s32 %v326_v54, 16  ;;  %v327_v41 = vand.u32 65535, %v326_v54 }
 0x18d   : > { %v263_v58 = vsel %vm255_vm7, %v2620_v34, 8  ;;  %vm256_vm8 = vcmp.le.f32.partialorder %v222_v30, %v244_v57  ;;  %v300_v59 = vcvt.s32.f32 %v298_v56  ;;  %v269_v30 = vcvt.s32.f32 %v267_v27 }
 0x18e   : > { %v341_v61 = vsel %vm186_vm1, %v263_v58, 2147483647  ;;  %v264_v62 = vsel %vm256_vm8, %v2620_v34, 8  ;;  %v330_v20 = vcvt.s32.f32 %v328_v60  ;;  %v299_v40 = vcvt.s32.f32 %v297_v32 }
 0x18f   : > { %v356_v16 = vsel %vm186_vm1, %v264_v62, 2147483647  ;;  %v247_v17 = vpop.xlane.xlu1 %246  ;;  %301 = vmin.xlane.f32.xlu0 %v300_v59  ;;  %v343_v18 = vshra.s32 %v341_v61, 16  ;;  %v342_v46 = vand.u32 65535, %v341_v61  ;;  %v329_v48 = vcvt.s32.f32 %v327_v41 }
 0x190   : > { %vm257_vm9 = vcmp.le.f32.partialorder %v223_v29, %v247_v17  ;;  %316 = vmin.xlane.f32.xlu1 %v315_v63  ;;  %v358_v22 = vshra.s32 %v356_v16, 16  ;;  %v357_v49 = vand.u32 65535, %v356_v16  ;;  %v2413_v41 = vmov 1.0|1.0  }
 0x191   : > { %v265_v19 = vsel %vm257_vm9, %v2620_v34, 8  ;;  %v345_v21 = vcvt.s32.f32 %v343_v18  ;;  %v344_v44 = vcvt.s32.f32 %v342_v46 }
 0x192   : > { %v371_v23 = vsel %vm186_vm1, %v265_v19, 2147483647  ;;  %v360_v25 = vcvt.s32.f32 %v358_v22  ;;  %v359_v55 = vcvt.s32.f32 %v357_v49 }
 0x193   : > { %331 = vmin.xlane.f32.xlu0 %v330_v20  ;;  %v373_v24 = vshra.s32 %v371_v23, 16  ;;  %v372_v51 = vand.u32 65535, %v371_v23 }
 0x194   : > { %346 = vmin.xlane.f32.xlu1 %v345_v21 }
 0x195   : > { %v375_v26 = vcvt.s32.f32 %v373_v24  ;;  %v374_v57 = vcvt.s32.f32 %v372_v51 }
 0x197   : > { %361 = vmin.xlane.f32.xlu0 %v360_v25 }
 0x198   : > { %376 = vmin.xlane.f32.xlu1 %v375_v26 }
 0x215   : > { %v272_v28 = vpop.xlane.xlu0 %271 }
 0x216   : > { %vm273_vm10 = vcmp.eq.f32.partialorder %v270_v43, %v272_v28  ;;  %v278_v60 = vcvt.f32.s32 %v272_v28 }
 0x217   : > { %v274_v29 = vsel %vm273_vm10, %v269_v30, inf }
 0x218   : > { %275 = vmin.xlane.f32.xlu0 %v274_v29 }
 0x219   : > { %v287_v33 = vpop.xlane.xlu1 %286 }
 0x21a   : > { %vm288_vm11 = vcmp.eq.f32.partialorder %v285_v52, %v287_v33  ;;  %v293_v61 = vcvt.f32.s32 %v287_v33 }
 0x21b   : > { %v289_v38 = vsel %vm288_vm11, %v284_v35, inf }
 0x21c   : > { %290 = vmin.xlane.f32.xlu1 %v289_v38  ;;  %v302_v39 = vpop.xlane.xlu0 %301  ;;  %v294_v18 = vshll.u32 %v293_v61, 16 }
 0x21d   : > { %v317_v42 = vpop.xlane.xlu1 %316  ;;  %vm303_vm12 = vcmp.eq.f32.partialorder %v300_v59, %v302_v39  ;;  %v308_v19 = vcvt.f32.s32 %v302_v39 }
 0x21e   : > { %v304_v47 = vsel %vm303_vm12, %v299_v40, inf  ;;  %vm318_vm13 = vcmp.eq.f32.partialorder %v315_v63, %v317_v42  ;;  %v279_v63 = vshll.u32 %v278_v60, 16 }
 0x21f   : > { %305 = vmin.xlane.f32.xlu0 %v304_v47  ;;  %v319_v43 = vsel %vm318_vm13, %v314_v37, inf }
 0x220   : > { %320 = vmin.xlane.f32.xlu1 %v319_v43  ;;  %v332_v45 = vpop.xlane.xlu0 %331 }
 0x221   : > { %v2642_v50 = vpop.xlane.xlu1 %346  ;;  %vm333_vm14 = vcmp.eq.f32.partialorder %v330_v20, %v332_v45  ;;  %v338_v23 = vcvt.f32.s32 %v332_v45 }
 0x222   : > { %v334_v52 = vsel %vm333_vm14, %v329_v48, inf  ;;  %vm348_vm15 = vcmp.eq.f32.partialorder %v345_v21, %v2642_v50  ;;  %v323_v21 = vcvt.f32.s32 %v317_v42  ;;  %v353_v32 = vcvt.f32.s32 %v2642_v50 }
 0x223   : > { %335 = vmin.xlane.f32.xlu0 %v334_v52  ;;  %v349_v53 = vsel %vm348_vm15, %v344_v44, inf  ;;  %v339_v35 = vshll.u32 %v338_v23, 16 }
 0x224   : > { %350 = vmin.xlane.f32.xlu1 %v349_v53  ;;  %v2645_v54 = vpop.xlane.xlu0 %361  ;;  %v324_v29 = vshll.u32 %v323_v21, 16  ;;  %v354_v49 = vshll.u32 %v353_v32, 16 }
 0x225   : > { %v2647_v56 = vpop.xlane.xlu1 %376  ;;  %vm363_vm2 = vcmp.eq.f32.partialorder %v360_v25, %v2645_v54  ;;  %v368_v39 = vcvt.f32.s32 %v2645_v54 }
 0x226   : > { %v364_v58 = vsel %vm363_vm2, %v359_v55, inf  ;;  %vm378_vm3 = vcmp.eq.f32.partialorder %v375_v26, %v2647_v56  ;;  %v309_v26 = vshll.u32 %v308_v19, 16  ;;  %v383_v47 = vcvt.f32.s32 %v2647_v56 }
 0x227   : > { %365 = vmin.xlane.f32.xlu0 %v364_v58  ;;  %v379_v59 = vsel %vm378_vm3, %v374_v57, inf  ;;  %v369_v58 = vshll.u32 %v368_v39, 16 }
 0x228   : > { %380 = vmin.xlane.f32.xlu1 %v379_v59  ;;  %v384_v59 = vshll.u32 %v383_v47, 16 }
 0x254   : > { %410 = vxpose.xlu0.b32.start [1/8] (short) (narrow) %v2458_v0, 64 }
 0x258   : > { %411 = vxpose.xlu0.b32.cont [2/8] (short) (narrow) %v2463_v1, 64 }
 0x25c   : > { %412 = vxpose.xlu0.b32.cont [3/8] (short) (narrow) %v2468_v2, 64 }
 0x260   : > { %413 = vxpose.xlu0.b32.cont [4/8] (short) (narrow) %v2473_v3, 64 }
 0x264   : > { %414 = vxpose.xlu0.b32.cont [5/8] (short) (narrow) %v2478_v4, 64 }
 0x268   : > { %415 = vxpose.xlu0.b32.cont [6/8] (short) (narrow) %v2483_v5, 64 }
 0x26c   : > { %416 = vxpose.xlu0.b32.cont [7/8] (short) (narrow) %v2488_v6, 64 }
 0x270   : > { %417 = vxpose.xlu0.b32.end [8/8] (short) (narrow) %v2493_v7, 64 }
 0x2a5   : > { %v276_v62 = vpop.xlane.xlu0 %275 }
 0x2a6   : > { %v277_v16 = vcvt.f32.s32 %v276_v62 }
 0x2a8   : > { %v280_v17 = vadd.s32 %v279_v63, %v277_v16 }
 0x2a9   : > { %v291_v20 = vpop.xlane.xlu1 %290 }
 0x2aa   : > { %v292_v22 = vcvt.f32.s32 %v291_v20  ;;  %vm386_vm4 = vcmp.eq.s32.totalorder %v2620_v34, %v280_v17 }
 0x2ab   : > { %v1759_v28 = vsel %vm386_vm4, 1.0, %v2412_v31 }
 0x2ac   : > { %v295_v24 = vadd.s32 %v294_v18, %v292_v22  ;;  %v306_v25 = vpop.xlane.xlu0 %305  ;;  %v571_v42 = vsel %vm186_vm1, %v1759_v28, 0.0 }
 0x2ad   : > { %v307_v27 = vcvt.f32.s32 %v306_v25  ;;  %v321_v30 = vpop.xlane.xlu1 %320 }
 0x2ae   : > { %v322_v33 = vcvt.f32.s32 %v321_v30  ;;  %vm387_vm5 = vcmp.eq.s32.totalorder %v2620_v34, %v295_v24 }
 0x2af   : > { %v310_v36 = vadd.s32 %v309_v26, %v307_v27  ;;  %v1760_v38 = vsel %vm387_vm5, 1.0, %v2412_v31  ;;  %vm2104_vm6 = vmpackc.low %vm387_vm5, %vm386_vm4 }
 0x2b0   : > { %v325_v40 = vadd.s32 %v324_v29, %v322_v33  ;;  %2105 = vmatprep.subr.msk.bf16.mxu1 %vm2104_vm6, %v2413_v41  ;;  %v572_v37 = vsel %vm186_vm1, %v1760_v38, 0.0  ;;  %v336_v46 = vpop.xlane.xlu0 %335 }
 0x2b1   : > { %v573_v43 = vadd.f32 %v572_v37, %v571_v42  ;;  %v337_v45 = vcvt.f32.s32 %v336_v46  ;;  %v351_v48 = vpop.xlane.xlu1 %350  ;;  %2107 = vmatpush3.bf16.msk.msra.mxu1 %vm2104_vm6, %v2413_v41  ;;  %vm388_vm7 = vcmp.eq.s32.totalorder %v2620_v34, %v310_v36 }
 0x2b2   : > { %v352_v50 = vcvt.f32.s32 %v351_v48  ;;  %vm389_vm8 = vcmp.eq.s32.totalorder %v2620_v34, %v325_v40  ;;  %v1761_v44 = vsel %vm388_vm7, 1.0, %v2412_v31 }
 0x2b3   : > { %v340_v51 = vadd.s32 %v339_v35, %v337_v45  ;;  %v1762_v52 = vsel %vm389_vm8, 1.0, %v2412_v31  ;;  %vm2108_vm9 = vmpackc.low %vm389_vm8, %vm388_vm7  ;;  %v574_v53 = vsel %vm186_vm1, %v1761_v44, 0.0 }
 0x2b4   : > { %v355_v54 = vadd.s32 %v354_v49, %v352_v50  ;;  %2109 = vmatprep.subr.msk.bf16.mxu1 %vm2108_vm9, %v2413_v41  ;;  %v575_v55 = vadd.f32 %v574_v53, %v573_v43  ;;  %v576_v56 = vsel %vm186_vm1, %v1762_v52, 0.0  ;;  %v366_v57 = vpop.xlane.xlu0 %365 }
 0x2b5   : > { %v367_v60 = vcvt.f32.s32 %v366_v57  ;;  %v381_v61 = vpop.xlane.xlu1 %380  ;;  %2111 = vmatpush3.bf16.msk.msra.mxu1 %vm2108_vm9, %v2413_v41  ;;  %vm390_vm10 = vcmp.eq.s32.totalorder %v2620_v34, %v340_v51 }
 0x2b6   : > { %v577_v62 = vadd.f32 %v576_v56, %v575_v55  ;;  %v382_v63 = vcvt.f32.s32 %v381_v61  ;;  %vm391_vm11 = vcmp.eq.s32.totalorder %v2620_v34, %v355_v54  ;;  %v1763_v16 = vsel %vm390_vm10, 1.0, %v2412_v31 }
 0x2b7   : > { %v370_v17 = vadd.s32 %v369_v58, %v367_v60  ;;  %v1764_v18 = vsel %vm391_vm11, 1.0, %v2412_v31  ;;  %vm2112_vm12 = vmpackc.low %vm391_vm11, %vm390_vm10  ;;  %v578_v19 = vsel %vm186_vm1, %v1763_v16, 0.0 }
 0x2b8   : > { %v385_v20 = vadd.s32 %v384_v59, %v382_v63  ;;  %2113 = vmatprep.subr.msk.bf16.mxu1 %vm2112_vm12, %v2413_v41  ;;  %v579_v21 = vadd.f32 %v578_v19, %v577_v62  ;;  %v580_v22 = vsel %vm186_vm1, %v1764_v18, 0.0 }
 0x2b9   : > { %2115 = vmatpush3.bf16.msk.msra.mxu1 %vm2112_vm12, %v2413_v41  ;;  %vm392_vm13 = vcmp.eq.s32.totalorder %v2620_v34, %v370_v17 }
 0x2ba   : > { %vm393_vm14 = vcmp.eq.s32.totalorder %v2620_v34, %v385_v20  ;;  %v581_v23 = vadd.f32 %v580_v22, %v579_v21  ;;  %v1765_v24 = vsel %vm392_vm13, 1.0, %v2412_v31 }
 0x2bb   : > { %v1766_v25 = vsel %vm393_vm14, 1.0, %v2412_v31  ;;  %vm2116_vm15 = vmpackc.low %vm393_vm14, %vm392_vm13  ;;  %v582_v26 = vsel %vm186_vm1, %v1765_v24, 0.0 }
 0x2bc   : > { %v584_v27 = vsel %vm186_vm1, %v1766_v25, 0.0  ;;  %2117 = vmatprep.subr.msk.bf16.mxu1 %vm2116_vm15, %v2413_v41  ;;  %v583_v30 = vadd.f32 %v582_v26, %v581_v23 }
 0x2bd   : > { %2119 = vmatpush3.bf16.msk.msra.mxu1 %vm2116_vm15, %v2413_v41 }
 0x2be   : > { %v585_v28 = vadd.f32 %v584_v27, %v583_v30 }
 0x2c0   : > { %v586_v40 = vrot.slane %v585_v28, 4 }
 0x2c2   : > { %v587_v41 = vadd.f32 %v586_v40, %v585_v28 }
 0x2c4   : > { %v588_v42 = vrot.slane %v587_v41, 2 }
 0x2c6   : > { %v589_v37 = vadd.f32 %v588_v42, %v587_v41 }
 0x2c8   : > { %v590_v46 = vrot.slane %v589_v37, 1 }
 0x2ca   : > { %v591_v47 = vadd.f32 %v590_v46, %v589_v37 }
 0x2cc   : > { %v593_v43 = vmax.f32 %v591_v47, 1.0  ;;  %vm592_vm2 = vcmp.gt.f32.partialorder %v591_v47, 0.0 }
 0x2ce   : > { %2268 = vrcp.f32 %v593_v43 }
 0x2d4   : > { %v426_v29 = vpop.trf.xlu0 }
 0x2d5   : > { %1973 = vmatprep.mubr.msk.f32.mxu1 %vm48_vm0, %v426_v29 }
 0x2d8   : > { %v427_v32 = vpop.trf.xlu0  ;;  %v2269_v45 = vpop.eup %2268 }
 0x2d9   : > { %1974 = vmatmul.mubr.msk.f32.vlgmr.msra.gmra.mrb[0].mxu1 %vm48_vm0, %v427_v32 }
 0x2dc   : > { %v428_v33 = vpop.trf.xlu0 }
 0x2dd   : > { %1976 = vmatprep.mubr.msk.f32.mxu1 %vm48_vm0, %v428_v33 }
 0x2e0   : > { %v429_v35 = vpop.trf.xlu0 }
 0x2e1   : > { %1977 = vmatmul.mubr.msk.f32.gmra.mrb[2].mxu1 %vm48_vm0, %v429_v35 }
 0x2e4   : > { %v430_v31 = vpop.trf.xlu0 }
 0x2e5   : > { %1979 = vmatprep.mubr.msk.f32.mxu1 %vm48_vm0, %v430_v31 }
 0x2e8   : > { %v431_v36 = vpop.trf.xlu0 }
 0x2e9   : > { %1980 = vmatmul.mubr.msk.f32.gmra.mrb[4].mxu1 %vm48_vm0, %v431_v36 }
 0x2ec   : > { %v432_v38 = vpop.trf.xlu0 }
 0x2ed   : > { %1982 = vmatprep.mubr.msk.f32.mxu1 %vm48_vm0, %v432_v38 }
 0x2f0   : > { %v433_v39 = vpop.trf.xlu0 }
 0x2f1   : > { %1983 = vmatmul.mubr.msk.f32.gmra.mrb[6].mxu1 %vm48_vm0, %v433_v39 }
 0x2f2   :  { %2001 = vmatprep.mubr.msk.f32.mxu1 (%p36_p0), %vm48_vm0, %v2458_v0 }
 0x3ac   : > { %v1975_v48 = vpop.f32.mrb[0].mxu1 }
 0x3ad   : > { %v596_v49 = vmul.f32 %v2269_v45, %v1975_v48  ;;  %v532_v50 = vpop.f32.mrb[1].mxu1 }
 0x3ae   : > { %v595_v44 = vmul.f32 %v2269_v45, %v532_v50 }
 0x3af   : > { %v2692_v9 = vsel %vm592_vm2, %v596_v49, %v2402_v9  }
 0x3b0   : > { %v3201_v51 = vmov %v2692_v9  ;;  %v2696_v8 = vsel %vm592_vm2, %v595_v44, %v2406_v8  }
 0x3b1   : > { %v3202_v52 = vmov %v2696_v8 }
 0x3b2   :  { %v2120_v20 = vpack.c.bf16 (%p36_p0), %v3201_v51, %v3202_v52 }
 0x3b4   : > { %v1978_v53 = vpop.f32.mrb[2].mxu1  ;;  %2121 = vmatprep.subr.bf16.mxu1 (%p36_p0), %v2120_v20 }
 0x3b5   : > { %v598_v54 = vmul.f32 %v2269_v45, %v1978_v53  ;;  %v542_v55 = vpop.f32.mrb[3].mxu1  ;;  %2123 = vmatpush3.bf16.msra.mxu1 (%p36_p0), %v2120_v20 }
 0x3b6   : > { %v597_v56 = vmul.f32 %v2269_v45, %v542_v55 }
 0x3b7   : > { %v2700_v11 = vsel %vm592_vm2, %v598_v54, %v2394_v11  }
 0x3b8   : > { %v3203_v57 = vmov %v2700_v11  ;;  %v2704_v10 = vsel %vm592_vm2, %v597_v56, %v2398_v10  }
 0x3b9   : > { %v3204_v58 = vmov %v2704_v10  ;;  %v746_v25 = vmul.f32 (%p36_p0), %v3203_v57, %v3203_v57 }
 0x3ba   : > { %v3214_v10 = vmov %v3204_v58  ;;  %v2124_v21 = vpack.c.bf16 (%p36_p0), %v3203_v57, %v3204_v58 }
 0x3bb   :  { %v743_v10 = vmul.f32 (%p36_p0), %v3202_v52, %v3202_v52  ;;  %v757_v28 = vsel (%p36_p0), %vm186_vm1, %v746_v25, 0.0 }
 0x3bc   : > { %v1981_v59 = vpop.f32.mrb[4].mxu1  ;;  %2125 = vmatprep.subr.bf16.mxu1 (%p36_p0), %v2124_v21 }
 0x3bd   : > { %v600_v60 = vmul.f32 %v2269_v45, %v1981_v59  ;;  %v552_v61 = vpop.f32.mrb[5].mxu1  ;;  %2127 = vmatpush3.bf16.msra.mxu1 (%p36_p0), %v2124_v21 }
 0x3be   : > { %v599_v9 = vmul.f32 %v2269_v45, %v552_v61 }
 0x3bf   : > { %v2708_v13 = vsel %vm592_vm2, %v600_v60, %v2386_v13  }
 0x3c0   : > { %v3205_v62 = vmov %v2708_v13  ;;  %v2712_v12 = vsel %vm592_vm2, %v599_v9, %v2390_v12   ;;  %v3215_v9 = vmov %v3201_v51 }
 0x3c1   : > { %v3206_v63 = vmov %v2712_v12  ;;  %v3211_v13 = vmov %v3205_v62  ;;  %v748_v32 = vmul.f32 (%p36_p0), %v3205_v62, %v3205_v62 }
 0x3c2   : > { %v3212_v12 = vmov %v3206_v63  ;;  %v2128_v22 = vpack.c.bf16 (%p36_p0), %v3205_v62, %v3206_v63  ;;  %v745_v13 = vmul.f32 (%p36_p0), %v3204_v58, %v3204_v58  ;;  %v747_v30 = vmul.f32 (%p36_p0), %v3206_v63, %v3206_v63 }
 0x3c3   :  { %v744_v12 = vmul.f32 (%p36_p0), %v3201_v51, %v3201_v51  ;;  %v761_v36 = vsel (%p36_p0), %vm186_vm1, %v748_v32, 0.0 }
 0x3c4   : > { %v1984_v8 = vpop.f32.mrb[6].mxu1  ;;  %38 = sbr.rel (!%p36_p0) target bundleno = 7 (0x7), region = 67  ;;  %2129 = vmatprep.subr.bf16.mxu1 (%p36_p0), %v2128_v22  ;;  %v755_v26 = vsel (%p36_p0), %vm186_vm1, %v745_v13, 0.0  ;;  %v759_v33 = vsel (%p36_p0), %vm186_vm1, %v747_v30, 0.0 }
 0x3c5   : > { %v602_v16 = vmul.f32 %v2269_v45, %v1984_v8  ;;  %v562_v17 = vpop.f32.mrb[7].mxu1  ;;  %v3216_v8 = vmov %v3202_v52  ;;  %2131 = vmatpush3.bf16.msra.mxu1 (%p36_p0), %v2128_v22 }
 0x3c6   : > { %v601_v11 = vmul.f32 %v2269_v45, %v562_v17 }
 0x3c7   : > { %v2716_v15 = vsel %vm592_vm2, %v602_v16, %v2378_v15  }
 0x3c8   : > { %v3207_v18 = vmov %v2716_v15  ;;  %v2720_v14 = vsel %vm592_vm2, %v601_v11, %v2382_v14   ;;  %v3213_v11 = vmov %v3203_v57 }
 0x3c9   : > { %v3208_v19 = vmov %v2720_v14  ;;  %v3209_v15 = vmov %v3207_v18  ;;  %v750_v39 = vmul.f32 (%p36_p0), %v3207_v18, %v3207_v18 }
 0x3ca   : > { %v3210_v14 = vmov %v3208_v19  ;;  %v2132_v23 = vpack.c.bf16 (%p36_p0), %v3207_v18, %v3208_v19  ;;  %v753_v15 = vsel (%p36_p0), %vm186_vm1, %v744_v12, 0.0  ;;  %v749_v31 = vmul.f32 (%p36_p0), %v3208_v19, %v3208_v19 }
 0x3cb   :  { %v752_v14 = vsel %vm186_vm1, %v743_v10, 0.0  ;;  %v765_v42 = vsel %vm186_vm1, %v750_v39, 0.0 }
 0x3cc   :  { %2133 = vmatprep.subr.bf16.mxu1 %v2132_v23  ;;  %v754_v24 = vadd.f32 %v753_v15, %v752_v14  ;;  %v763_v40 = vsel %vm186_vm1, %v749_v31, 0.0 }
 0x3cd   :  { %2135 = vmatpush3.bf16.msra.mxu1 %v2132_v23 }
 0x3ce   :  { %v756_v27 = vadd.f32 %v755_v26, %v754_v24 }
 0x3d0   :  { %2002 = vmatmul.mubr.msk.f32.vlgmr.msra.gmra.mrb[0].mxu1 %vm48_vm0, %v2463_v1  ;;  %v758_v29 = vadd.f32 %v757_v28, %v756_v27 }
 0x3d1   :  { %2004 = vmatprep.mubr.msk.f32.mxu1 %vm48_vm0, %v2468_v2 }
 0x3d2   :  { %v760_v35 = vadd.f32 %v759_v33, %v758_v29 }
 0x3d4   :  { %2005 = vmatmul.mubr.msk.f32.gmra.mrb[2].mxu1 %vm48_vm0, %v2473_v3  ;;  %v762_v38 = vadd.f32 %v761_v36, %v760_v35 }
 0x3d5   :  { %2007 = vmatprep.mubr.msk.f32.mxu1 %vm48_vm0, %v2478_v4 }
 0x3d6   :  { %v764_v41 = vadd.f32 %v763_v40, %v762_v38 }
 0x3d8   :  { %2008 = vmatmul.mubr.msk.f32.gmra.mrb[4].mxu1 %vm48_vm0, %v2483_v5  ;;  %v766_v37 = vadd.f32 %v765_v42, %v764_v41 }
 0x3d9   :  { %2010 = vmatprep.mubr.msk.f32.mxu1 %vm48_vm0, %v2488_v6 }
 0x3da   :  { %v767_v46 = vrot.slane %v766_v37, 4 }
 0x3dc   :  { %2011 = vmatmul.mubr.msk.f32.gmra.mrb[6].mxu1 %vm48_vm0, %v2493_v7  ;;  %v768_v47 = vadd.f32 %v767_v46, %v766_v37 }
 0x3de   :  { %v769_v43 = vrot.slane %v768_v47, 2 }
 0x3e0   :  { %v770_v45 = vadd.f32 %v769_v43, %v768_v47 }
 0x3e2   :  { %v771_v48 = vrot.slane %v770_v45, 1 }
 0x3e4   :  { %v772_v50 = vadd.f32 %v771_v48, %v770_v45 }
 0x4a3   :  { %v2003_v49 = vpop.f32.mrb[0].mxu1 }
 0x4a4   :  { %v704_v44 = vpop.f32.mrb[1].mxu1  ;;  %v774_v53 = vmul.f32 2.0, %v2003_v49 }
 0x4a5   :  { %v773_v54 = vmul.f32 2.0, %v704_v44 }
 0x4a6   :  { %v782_v8 = vsub.f32 %v772_v50, %v774_v53 }
 0x4a7   :  { %v2006_v55 = vpop.f32.mrb[2].mxu1  ;;  %v781_v56 = vsub.f32 %v772_v50, %v773_v54 }
 0x4a8   :  { %v776_v59 = vmul.f32 2.0, %v2006_v55  ;;  %v714_v60 = vpop.f32.mrb[3].mxu1  ;;  %v792_v10 = vsel %vm186_vm1, %v782_v8, inf }
 0x4a9   :  { %v775_v61 = vmul.f32 2.0, %v714_v60  ;;  %v789_v9 = vsel %vm186_vm1, %v781_v56, inf }
 0x4aa   :  { %790 = vmin.xlane.f32.xlu0 %v789_v9  ;;  %v784_v16 = vsub.f32 %v772_v50, %v776_v59 }
 0x4ab   :  { %v2009_v17 = vpop.f32.mrb[4].mxu1  ;;  %v783_v22 = vsub.f32 %v772_v50, %v775_v61 }
 0x4ac   :  { %v778_v11 = vmul.f32 2.0, %v2009_v17  ;;  %v724_v20 = vpop.f32.mrb[5].mxu1  ;;  %v798_v21 = vsel %vm186_vm1, %v784_v16, inf }
 0x4ad   :  { %v777_v23 = vmul.f32 2.0, %v724_v20  ;;  %799 = vmin.xlane.f32.xlu1 %v798_v21  ;;  %v795_v25 = vsel %vm186_vm1, %v783_v22, inf }
 0x4ae   :  { %793 = vmin.xlane.f32.xlu0 %v792_v10  ;;  %v786_v12 = vsub.f32 %v772_v50, %v778_v11 }
 0x4af   :  { %v2012_v13 = vpop.f32.mrb[6].mxu1  ;;  %v785_v14 = vsub.f32 %v772_v50, %v777_v23 }
 0x4b0   :  { %v780_v15 = vmul.f32 2.0, %v2012_v13  ;;  %v734_v24 = vpop.f32.mrb[7].mxu1  ;;  %v804_v30 = vsel %vm186_vm1, %v786_v12, inf }
 0x4b1   :  { %v779_v26 = vmul.f32 2.0, %v734_v24  ;;  %796 = vmin.xlane.f32.xlu1 %v795_v25  ;;  %v801_v27 = vsel %vm186_vm1, %v785_v14, inf }
 0x4b2   :  { %802 = vmin.xlane.f32.xlu0 %v801_v27  ;;  %v788_v28 = vsub.f32 %v772_v50, %v780_v15 }
 0x4b3   :  { %v787_v29 = vsub.f32 %v772_v50, %v779_v26 }
 0x4b4   :  { %v810_v33 = vsel %vm186_vm1, %v788_v28, inf }
 0x4b5   :  { %805 = vmin.xlane.f32.xlu1 %v804_v30  ;;  %v807_v32 = vsel %vm186_vm1, %v787_v29, inf }
 0x4b6   :  { %808 = vmin.xlane.f32.xlu0 %v807_v32 }
 0x4b9   :  { %811 = vmin.xlane.f32.xlu1 %v810_v33 }
 0x537   :  { %v791_v35 = vpop.xlane.xlu0 %790 }
 0x538   :  { %vm815_vm3 = vcmp.le.f32.partialorder %v781_v56, %v791_v35 }
 0x539   :  { %v823_v31 = vsel %vm815_vm3, %v2620_v34, 8 }
 0x53a   :  { %v831_v36 = vsel %vm186_vm1, %v823_v31, 2147483647  ;;  %v800_v38 = vpop.xlane.xlu1 %799 }
 0x53b   :  { %vm818_vm4 = vcmp.le.f32.partialorder %v784_v16, %v800_v38  ;;  %v794_v39 = vpop.xlane.xlu0 %793  ;;  %v833_v40 = vshra.s32 %v831_v36, 16  ;;  %v832_v26 = vand.u32 65535, %v831_v36 }
 0x53c   :  { %v826_v41 = vsel %vm818_vm4, %v2620_v34, 8  ;;  %vm816_vm5 = vcmp.le.f32.partialorder %v782_v8, %v794_v39 }
 0x53d   :  { %v824_v42 = vsel %vm816_vm5, %v2620_v34, 8  ;;  %v835_v37 = vcvt.s32.f32 %v833_v40  ;;  %v2810_v46 = vsel %vm186_vm1, %v826_v41, 2147483647 }
 0x53e   :  { %v846_v47 = vsel %vm186_vm1, %v824_v42, 2147483647  ;;  %v797_v43 = vpop.xlane.xlu1 %796  ;;  %v878_v54 = vshra.s32 %v2810_v46, 16  ;;  %v877_v33 = vand.u32 65535, %v2810_v46 }
 0x53f   :  { %vm817_vm6 = vcmp.le.f32.partialorder %v783_v22, %v797_v43  ;;  %v803_v45 = vpop.xlane.xlu0 %802  ;;  %836 = vmin.xlane.f32.xlu0 %v835_v37  ;;  %v848_v48 = vshra.s32 %v846_v47, 16  ;;  %v847_v27 = vand.u32 65535, %v846_v47 }
 0x540   :  { %v825_v49 = vsel %vm817_vm6, %v2620_v34, 8  ;;  %vm819_vm7 = vcmp.le.f32.partialorder %v785_v14, %v803_v45  ;;  %v880_v11 = vcvt.s32.f32 %v878_v54  ;;  %v879_v36 = vcvt.s32.f32 %v877_v33 }
 0x541   :  { %v861_v50 = vsel %vm186_vm1, %v825_v49, 2147483647  ;;  %v827_v44 = vsel %vm819_vm7, %v2620_v34, 8  ;;  %v850_v53 = vcvt.s32.f32 %v848_v48  ;;  %v849_v31 = vcvt.s32.f32 %v847_v27 }
 0x542   :  { %v891_v55 = vsel %vm186_vm1, %v827_v44, 2147483647  ;;  %v806_v56 = vpop.xlane.xlu1 %805  ;;  %v863_v59 = vshra.s32 %v861_v50, 16  ;;  %v862_v32 = vand.u32 65535, %v861_v50 }
 0x543   :  { %vm820_vm8 = vcmp.le.f32.partialorder %v786_v12, %v806_v56  ;;  %851 = vmin.xlane.f32.xlu1 %v850_v53  ;;  %v809_v60 = vpop.xlane.xlu0 %808  ;;  %v893_v8 = vshra.s32 %v891_v55, 16  ;;  %v892_v39 = vand.u32 65535, %v891_v55 }
 0x544   :  { %v828_v61 = vsel %vm820_vm8, %v2620_v34, 8  ;;  %vm821_vm9 = vcmp.le.f32.partialorder %v787_v29, %v809_v60  ;;  %v865_v9 = vcvt.s32.f32 %v863_v59  ;;  %v834_v29 = vcvt.s32.f32 %v832_v26 }
 0x545   :  { %v906_v16 = vsel %vm186_vm1, %v828_v61, 2147483647  ;;  %v829_v17 = vsel %vm821_vm9, %v2620_v34, 8  ;;  %v895_v10 = vcvt.s32.f32 %v893_v8  ;;  %v864_v41 = vcvt.s32.f32 %v862_v32 }
 0x546   :  { %v921_v20 = vsel %vm186_vm1, %v829_v17, 2147483647  ;;  %v812_v21 = vpop.xlane.xlu1 %811  ;;  %866 = vmin.xlane.f32.xlu0 %v865_v9  ;;  %v908_v22 = vshra.s32 %v906_v16, 16  ;;  %v907_v42 = vand.u32 65535, %v906_v16  ;;  %v894_v46 = vcvt.s32.f32 %v892_v39 }
 0x547   :  { %vm822_vm10 = vcmp.le.f32.partialorder %v788_v28, %v812_v21  ;;  %881 = vmin.xlane.f32.xlu1 %v880_v11  ;;  %v923_v13 = vshra.s32 %v921_v20, 16  ;;  %v922_v45 = vand.u32 65535, %v921_v20 }
 0x548   :  { %v830_v23 = vsel %vm822_vm10, %v2620_v34, 8  ;;  %v910_v12 = vcvt.s32.f32 %v908_v22  ;;  %v909_v44 = vcvt.s32.f32 %v907_v42 }
 0x549   :  { %v936_v14 = vsel %vm186_vm1, %v830_v23, 2147483647  ;;  %v925_v24 = vcvt.s32.f32 %v923_v13  ;;  %v924_v56 = vcvt.s32.f32 %v922_v45 }
 0x54a   :  { %896 = vmin.xlane.f32.xlu0 %v895_v10  ;;  %v938_v15 = vshra.s32 %v936_v14, 16  ;;  %v937_v49 = vand.u32 65535, %v936_v14 }
 0x54b   :  { %911 = vmin.xlane.f32.xlu1 %v910_v12 }
 0x54c   :  { %v940_v25 = vcvt.s32.f32 %v938_v15  ;;  %v939_v60 = vcvt.s32.f32 %v937_v49  ;;  %v2414_v15 = vmov 0.0  }
 0x54e   :  { %926 = vmin.xlane.f32.xlu0 %v925_v24 }
 0x54f   :  { %941 = vmin.xlane.f32.xlu1 %v940_v25 }
 0x5cc   :  { %v837_v30 = vpop.xlane.xlu0 %836 }
 0x5cd   :  { %vm838_vm11 = vcmp.eq.f32.partialorder %v835_v37, %v837_v30  ;;  %v843_v8 = vcvt.f32.s32 %v837_v30 }
 0x5ce   :  { %v839_v28 = vsel %vm838_vm11, %v834_v29, inf }
 0x5cf   :  { %840 = vmin.xlane.f32.xlu0 %v839_v28  ;;  %v844_v17 = vshll.u32 %v843_v8, 16 }
 0x5d0   :  { %v852_v35 = vpop.xlane.xlu1 %851 }
 0x5d1   :  { %vm853_vm12 = vcmp.eq.f32.partialorder %v850_v53, %v852_v35 }
 0x5d2   :  { %v854_v38 = vsel %vm853_vm12, %v849_v31, inf }
 0x5d3   :  { %855 = vmin.xlane.f32.xlu1 %v854_v38  ;;  %v867_v40 = vpop.xlane.xlu0 %866 }
 0x5d4   :  { %v882_v43 = vpop.xlane.xlu1 %881  ;;  %vm868_vm13 = vcmp.eq.f32.partialorder %v865_v9, %v867_v40  ;;  %v873_v22 = vcvt.f32.s32 %v867_v40 }
 0x5d5   :  { %v869_v47 = vsel %vm868_vm13, %v864_v41, inf  ;;  %vm883_vm14 = vcmp.eq.f32.partialorder %v880_v11, %v882_v43  ;;  %v858_v11 = vcvt.f32.s32 %v852_v35 }
 0x5d6   :  { %870 = vmin.xlane.f32.xlu0 %v869_v47  ;;  %v884_v37 = vsel %vm883_vm14, %v879_v36, inf  ;;  %v874_v27 = vshll.u32 %v873_v22, 16 }
 0x5d7   :  { %885 = vmin.xlane.f32.xlu1 %v884_v37  ;;  %v897_v48 = vpop.xlane.xlu0 %896 }
 0x5d8   :  { %v2825_v50 = vpop.xlane.xlu1 %911  ;;  %vm898_vm15 = vcmp.eq.f32.partialorder %v895_v10, %v897_v48  ;;  %v859_v10 = vshll.u32 %v858_v11, 16  ;;  %v903_v14 = vcvt.f32.s32 %v897_v48 }
 0x5d9   :  { %v899_v53 = vsel %vm898_vm15, %v894_v46, inf  ;;  %vm913_vm2 = vcmp.eq.f32.partialorder %v910_v12, %v2825_v50  ;;  %v888_v12 = vcvt.f32.s32 %v882_v43  ;;  %v918_v32 = vcvt.f32.s32 %v2825_v50 }
 0x5da   :  { %900 = vmin.xlane.f32.xlu0 %v899_v53  ;;  %v914_v54 = vsel %vm913_vm2, %v909_v44, inf  ;;  %v904_v35 = vshll.u32 %v903_v14, 16  ;;  %v2415_v43 = vmov 1.0|1.0  }
 0x5db   :  { %915 = vmin.xlane.f32.xlu1 %v914_v54  ;;  %v2828_v55 = vpop.xlane.xlu0 %926  ;;  %v889_v28 = vshll.u32 %v888_v12, 16  ;;  %v919_v46 = vshll.u32 %v918_v32, 16 }
 0x5dc   :  { %v2830_v59 = vpop.xlane.xlu1 %941  ;;  %vm928_vm3 = vcmp.eq.f32.partialorder %v925_v24, %v2828_v55  ;;  %v933_v39 = vcvt.f32.s32 %v2828_v55 }
 0x5dd   :  { %v929_v61 = vsel %vm928_vm3, %v924_v56, inf  ;;  %vm943_vm4 = vcmp.eq.f32.partialorder %v940_v25, %v2830_v59  ;;  %v948_v47 = vcvt.f32.s32 %v2830_v59  ;;  %vm1186_vm3 = vcmask 57344  }
 0x5de   :  { %930 = vmin.xlane.f32.xlu0 %v929_v61  ;;  %v944_v9 = vsel %vm943_vm4, %v939_v60, inf  ;;  %v934_v61 = vshll.u32 %v933_v39, 16  ;;  %vm2417_vm4 = vmmov 0  }
 0x5df   :  { %945 = vmin.xlane.f32.xlu1 %v944_v9  ;;  %v949_v9 = vshll.u32 %v948_v47, 16 }
 0x60b   :  { %975 = vxpose.xlu0.b32.start [1/8] (short) (narrow) %v2458_v0, 64 }
 0x60f   :  { %976 = vxpose.xlu0.b32.cont [2/8] (short) (narrow) %v2463_v1, 64 }
 0x613   :  { %977 = vxpose.xlu0.b32.cont [3/8] (short) (narrow) %v2468_v2, 64 }
 0x617   :  { %978 = vxpose.xlu0.b32.cont [4/8] (short) (narrow) %v2473_v3, 64 }
 0x61b   :  { %979 = vxpose.xlu0.b32.cont [5/8] (short) (narrow) %v2478_v4, 64 }
 0x61f   :  { %980 = vxpose.xlu0.b32.cont [6/8] (short) (narrow) %v2483_v5, 64 }
 0x623   :  { %981 = vxpose.xlu0.b32.cont [7/8] (short) (narrow) %v2488_v6, 64 }
 0x627   :  { %982 = vxpose.xlu0.b32.end [8/8] (short) (narrow) %v2493_v7, 64 }
 0x65c   :  { %v841_v16 = vpop.xlane.xlu0 %840 }
 0x65d   :  { %v842_v20 = vcvt.f32.s32 %v841_v16 }
 0x65f   :  { %v845_v21 = vadd.s32 %v844_v17, %v842_v20 }
 0x660   :  { %v856_v23 = vpop.xlane.xlu1 %855 }
 0x661   :  { %vm951_vm5 = vcmp.eq.s32.totalorder %v2620_v34, %v845_v21  ;;  %v857_v13 = vcvt.f32.s32 %v856_v23 }
 0x662   :  { %v2846_v24 = vsel %vm951_vm5, 1.0, %v2414_v15 }
 0x663   :  { %1178 = vst.msk [vmem:[%s3196_s2] sm:$0xff] %vm186_vm1, %v2846_v24  ;;  %v860_v25 = vadd.s32 %v859_v10, %v857_v13  ;;  %2057 = vmatprep.mubr.msk.f32.mxu0 %vm186_vm1, %v2846_v24  ;;  %v871_v26 = vpop.xlane.xlu0 %870  ;;  %v1136_v40 = vsel %vm186_vm1, %v2846_v24, 0.0 }
 0x664   :  { %v872_v30 = vcvt.f32.s32 %v871_v26  ;;  %v886_v29 = vpop.xlane.xlu1 %885 }
 0x665   :  { %vm952_vm6 = vcmp.eq.s32.totalorder %v2620_v34, %v860_v25  ;;  %v887_v33 = vcvt.f32.s32 %v886_v29 }
 0x666   :  { %v2858_v31 = vsel %vm952_vm6, 1.0, %v2414_v15  ;;  %v875_v38 = vadd.s32 %v874_v27, %v872_v30  ;;  %vm2136_vm7 = vmpackc.low %vm952_vm6, %vm951_vm5 }
 0x667   :  { %v1137_v41 = vsel %vm186_vm1, %v2858_v31, 0.0  ;;  %1179 = vst.msk [vmem:[%s3196_s2 + $0x8] sm:$0xff] %vm186_vm1, %v2858_v31  ;;  %v890_v42 = vadd.s32 %v889_v28, %v887_v33  ;;  %2137 = vmatprep.subr.msk.bf16.mxu1 %vm2136_vm7, %v2415_v43  ;;  %v901_v36 = vpop.xlane.xlu0 %900  ;;  %vm2967_vm6 = vmpackc.low %vm186_vm1, %vm186_vm1 }
 0x668   :  { %v1138_v37 = vadd.f32 %v1137_v41, %v1136_v40  ;;  %vm953_vm8 = vcmp.eq.s32.totalorder %v2620_v34, %v875_v38  ;;  %v902_v45 = vcvt.f32.s32 %v901_v36  ;;  %v916_v48 = vpop.xlane.xlu1 %915  ;;  %2139 = vmatpush3.bf16.msk.msra.mxu1 %vm2136_vm7, %v2415_v43 }
 0x669   :  { %v2875_v49 = vsel %vm953_vm8, 1.0, %v2414_v15  ;;  %vm954_vm9 = vcmp.eq.s32.totalorder %v2620_v34, %v890_v42  ;;  %v917_v50 = vcvt.f32.s32 %v916_v48  ;;  %v2416_v48 = vmov 0.0|0.0  }
 0x66a   :  { %v1139_v44 = vsel %vm186_vm1, %v2875_v49, 0.0  ;;  %1180 = vst.msk [vmem:[%s3196_s2 + $0x10] sm:$0xff] %vm186_vm1, %v2875_v49  ;;  %v2886_v53 = vsel %vm954_vm9, 1.0, %v2414_v15  ;;  %v905_v54 = vadd.s32 %v904_v35, %v902_v45  ;;  %vm2140_vm10 = vmpackc.low %vm954_vm9, %vm953_vm8 }
 0x66b   :  { %v1140_v55 = vadd.f32 %v1139_v44, %v1138_v37  ;;  %v1141_v56 = vsel %vm186_vm1, %v2886_v53, 0.0  ;;  %1181 = vst.msk [vmem:[%s3196_s2 + $0x18] sm:$0xff] %vm186_vm1, %v2886_v53  ;;  %v920_v59 = vadd.s32 %v919_v46, %v917_v50  ;;  %2141 = vmatprep.subr.msk.bf16.mxu1 %vm2140_vm10, %v2415_v43  ;;  %v931_v60 = vpop.xlane.xlu0 %930 }
 0x66c   :  { %vm955_vm11 = vcmp.eq.s32.totalorder %v2620_v34, %v905_v54  ;;  %v932_v8 = vcvt.f32.s32 %v931_v60  ;;  %v946_v16 = vpop.xlane.xlu1 %945  ;;  %2143 = vmatpush3.bf16.msk.msra.mxu1 %vm2140_vm10, %v2415_v43 }
 0x66d   :  { %v1142_v17 = vadd.f32 %v1141_v56, %v1140_v55  ;;  %v2897_v11 = vsel %vm955_vm11, 1.0, %v2414_v15  ;;  %vm956_vm12 = vcmp.eq.s32.totalorder %v2620_v34, %v920_v59  ;;  %v947_v20 = vcvt.f32.s32 %v946_v16 }
 0x66e   :  { %v1143_v21 = vsel %vm186_vm1, %v2897_v11, 0.0  ;;  %1182 = vst.msk [vmem:[%s3196_s2 + $0x20] sm:$0xff] %vm186_vm1, %v2897_v11  ;;  %v2908_v22 = vsel %vm956_vm12, 1.0, %v2414_v15  ;;  %v935_v23 = vadd.s32 %v934_v61, %v932_v8  ;;  %vm2144_vm13 = vmpackc.low %vm956_vm12, %vm955_vm11 }
 0x66f   :  { %v1144_v10 = vadd.f32 %v1143_v21, %v1142_v17  ;;  %v1145_v12 = vsel %vm186_vm1, %v2908_v22, 0.0  ;;  %1183 = vst.msk [vmem:[%s3196_s2 + $0x28] sm:$0xff] %vm186_vm1, %v2908_v22  ;;  %v950_v13 = vadd.s32 %v949_v9, %v947_v20  ;;  %2145 = vmatprep.subr.msk.bf16.mxu1 %vm2144_vm13, %v2415_v43 }
 0x670   :  { %vm957_vm14 = vcmp.eq.s32.totalorder %v2620_v34, %v935_v23  ;;  %2147 = vmatpush3.bf16.msk.msra.mxu1 %vm2144_vm13, %v2415_v43 }
 0x671   :  { %v1146_v14 = vadd.f32 %v1145_v12, %v1144_v10  ;;  %v2919_v25 = vsel %vm957_vm14, 1.0, %v2414_v15  ;;  %vm958_vm15 = vcmp.eq.s32.totalorder %v2620_v34, %v950_v13 }
 0x672   :  { %v1147_v26 = vsel %vm186_vm1, %v2919_v25, 0.0  ;;  %1184 = vst.msk [vmem:[%s3196_s2 + $0x30] sm:$0xff] %vm186_vm1, %v2919_v25  ;;  %v2930_v27 = vsel %vm958_vm15, 1.0, %v2414_v15  ;;  %vm2148_vm2 = vmpackc.low %vm958_vm15, %vm957_vm14 }
 0x673   :  { %v1148_v30 = vadd.f32 %v1147_v26, %v1146_v14  ;;  %v1149_v29 = vsel %vm186_vm1, %v2930_v27, 0.0  ;;  %1185 = vst.msk [vmem:[%s3196_s2 + $0x38] sm:$0xff] %vm186_vm1, %v2930_v27  ;;  %2149 = vmatprep.subr.msk.bf16.mxu1 %vm2148_vm2, %v2415_v43  ;;  %s2418_s2 = smov [#allocation2]  }
 0x674   :  { %2151 = vmatpush3.bf16.msk.msra.mxu1 %vm2148_vm2, %v2415_v43  ;;  %s1690_s20 = sshll.u32 %s2418_s2, 4  ;;  %s1691_s20 = int_to_ptr.vmem [resolvable:$true] %s1690_s20 }
 0x675   :  { %v1150_v34 = vadd.f32 %v1149_v29, %v1148_v30  ;;  %2176 = vmatprep.subr.bf16.mxu1 %v2416_v48  ;;  %s2292_s21 = scalar_lea.vmem %s1691_s20, 16  ;;  %s2296_s22 = scalar_lea.vmem %s1691_s20, 32 }
 0x676   :  { %p2293_p1 = scmp.ne.s32.totalorder %s1691_s20, %s2292_s21  ;;  %p2297_p2 = scmp.lt.s32.totalorder %s1691_s20, %s1691_s20 }
 0x677   :  { %v1151_v28 = vrot.slane %v1150_v34, 4  ;;  %p2298_p3 = scmp.lt.s32.totalorder %s2296_s22, %s2292_s21 }
 0x679   :  { %v1152_v32 = vadd.f32 %v1151_v28, %v1150_v34  ;;  %p2299_p4 = por %p2298_p3, %p2297_p2 }
 0x67b   :  { %v1153_v33 = vrot.slane %v1152_v32, 2  ;;  %p2300_p5 = pnand %p2299_p4, %p2293_p1 }
 0x67d   :  { %v1154_v35 = vadd.f32 %v1153_v33, %v1152_v32 }
 0x67f   :  { %v1155_v38 = vrot.slane %v1154_v35, 1 }
 0x681   :  { %v2939_v39 = vadd.f32 %v1155_v38, %v1154_v35 }
 0x683   :  { %1187 = vst.msk [vmem:[#allocation2] sm:$0x1] %vm1186_vm3, %v2939_v39  ;;  %v1158_v46 = vmax.f32 %v2939_v39, 1.0  ;;  %vm1157_vm5 = vcmp.gt.f32.partialorder %v2939_v39, 0.0 }
 0x685   :  { %2270 = vrcp.f32 %v1158_v46 }
 0x68b   :  { %v991_v40 = vpop.trf.xlu0 }
 0x68c   :  { %2029 = vmatprep.mubr.msk.f32.mxu1 %vm48_vm0, %v991_v40 }
 0x68f   :  { %v992_v41 = vpop.trf.xlu0  ;;  %v2271_v50 = vpop.eup %2270 }
 0x690   :  { %2030 = vmatmul.mubr.msk.f32.vlgmr.msra.gmra.mrb[8].mxu1 %vm48_vm0, %v992_v41 }
 0x693   :  { %v993_v42 = vpop.trf.xlu0 }
 0x694   :  { %2032 = vmatprep.mubr.msk.f32.mxu1 %vm48_vm0, %v993_v42 }
 0x697   :  { %v994_v43 = vpop.trf.xlu0 }
 0x698   :  { %2033 = vmatmul.mubr.msk.f32.gmra.mrb[10].mxu1 %vm48_vm0, %v994_v43 }
 0x69b   :  { %v995_v36 = vpop.trf.xlu0 }
 0x69c   :  { %2035 = vmatprep.mubr.msk.f32.mxu1 %vm48_vm0, %v995_v36 }
 0x69f   :  { %v996_v47 = vpop.trf.xlu0 }
 0x6a0   :  { %2036 = vmatmul.mubr.msk.f32.gmra.mrb[12].mxu1 %vm48_vm0, %v996_v47 }
 0x6a3   :  { %v997_v37 = vpop.trf.xlu0 }
 0x6a4   :  { %2038 = vmatprep.mubr.msk.f32.mxu1 %vm48_vm0, %v997_v37 }
 0x6a7   :  { %v998_v45 = vpop.trf.xlu0 }
 0x6a8   :  { %2039 = vmatmul.mubr.msk.f32.gmra.mrb[14].mxu1 %vm48_vm0, %v998_v45 }
 0x6a9   :  { %2085 = vmatprep.mubr.msk.f32.mxu1 %vm2417_vm4, %v2414_v15 }
 0x763   :  { %v2031_v44 = vpop.f32.mrb[8].mxu1 }
 0x764   :  { %v1161_v54 = vmul.f32 %v2271_v50, %v2031_v44  ;;  %v1097_v55 = vpop.f32.mrb[9].mxu1 }
 0x765   :  { %v1160_v56 = vmul.f32 %v2271_v50, %v1097_v55 }
 0x766   :  { %v2958_v59 = vsel %vm1157_vm5, %v1161_v54, %v3201_v51 }
 0x767   :  { %v2963_v60 = vsel %vm1157_vm5, %v1160_v56, %v3202_v52  ;;  %v1530_v51 = vmul.f32 %v2958_v59, %v2958_v59 }
 0x768   :  { %v2152_v9 = vpack.c.bf16 %v2958_v59, %v2963_v60  ;;  %v1529_v52 = vmul.f32 %v2963_v60, %v2963_v60 }
 0x769   :  { %v1538_v10 = vsel %vm186_vm1, %v1530_v51, 0.0 }
 0x76a   :  { %2154 = vmatprep.subr.msk.bf16.mxu0 %vm2967_vm6, %v2152_v9  ;;  %v1537_v12 = vsel %vm186_vm1, %v1529_v52, 0.0 }
 0x76b   :  { %v2034_v8 = vpop.f32.mrb[10].mxu1  ;;  %2157 = vmatpush3.bf16.xpose.msk.msra.mxu0 %vm2967_vm6, %v2152_v9 }
 0x76c   :  { %v1163_v16 = vmul.f32 %v2271_v50, %v2034_v8  ;;  %v1107_v17 = vpop.f32.mrb[11].mxu1 }
 0x76d   :  { %v1162_v20 = vmul.f32 %v2271_v50, %v1107_v17 }
 0x76e   :  { %v2984_v21 = vsel %vm1157_vm5, %v1163_v16, %v3203_v57  ;;  %v1539_v57 = vadd.f32 %v1538_v10, %v1537_v12 }
 0x76f   :  { %v2989_v23 = vsel %vm1157_vm5, %v1162_v20, %v3204_v58  ;;  %v1532_v58 = vmul.f32 %v2984_v21, %v2984_v21 }
 0x770   :  { %v2158_v13 = vpack.c.bf16 %v2984_v21, %v2989_v23  ;;  %v1531_v14 = vmul.f32 %v2989_v23, %v2989_v23 }
 0x771   :  { %v1542_v38 = vsel %vm186_vm1, %v1532_v58, 0.0 }
 0x772   :  { %v1540_v26 = vsel %vm186_vm1, %v1531_v14, 0.0  ;;  %2160 = vmatprep.subr.msk.bf16.mxu0 %vm2967_vm6, %v2158_v13 }
 0x773   :  { %v2037_v30 = vpop.f32.mrb[12].mxu1  ;;  %2163 = vmatpush3.bf16.xpose.msk.msra.mxu0 %vm2967_vm6, %v2158_v13  ;;  %v1541_v28 = vadd.f32 %v1540_v26, %v1539_v57 }
 0x774   :  { %v1165_v29 = vmul.f32 %v2271_v50, %v2037_v30  ;;  %v1117_v34 = vpop.f32.mrb[13].mxu1 }
 0x775   :  { %v1164_v32 = vmul.f32 %v2271_v50, %v1117_v34  ;;  %v1543_v43 = vadd.f32 %v1542_v38, %v1541_v28 }
 0x776   :  { %v1175_v33 = vsel %vm1157_vm5, %v1165_v29, %v3205_v62 }
 0x777   :  { %v1174_v35 = vsel %vm1157_vm5, %v1164_v32, %v3206_v63  ;;  %v1534_v40 = vmul.f32 %v1175_v33, %v1175_v33 }
 0x778   :  { %v2164_v41 = vpack.c.bf16 %v1175_v33, %v1174_v35  ;;  %v1533_v42 = vmul.f32 %v1174_v35, %v1174_v35 }
 0x779   :  { %v1546_v62 = vsel %vm186_vm1, %v1534_v40, 0.0 }
 0x77a   :  { %v1544_v36 = vsel %vm186_vm1, %v1533_v42, 0.0  ;;  %2166 = vmatprep.subr.msk.bf16.mxu0 %vm2967_vm6, %v2164_v41 }
 0x77b   :  { %v1545_v47 = vadd.f32 %v1544_v36, %v1543_v43  ;;  %v2040_v37 = vpop.f32.mrb[14].mxu1  ;;  %2169 = vmatpush3.bf16.xpose.msk.msra.mxu0 %vm2967_vm6, %v2164_v41 }
 0x77c   :  { %v1167_v45 = vmul.f32 %v2271_v50, %v2040_v37  ;;  %v1127_v63 = vpop.f32.mrb[15].mxu1 }
 0x77d   :  { %v1166_v46 = vmul.f32 %v2271_v50, %v1127_v63  ;;  %v1547_v44 = vadd.f32 %v1546_v62, %v1545_v47 }
 0x77e   :  { %v1177_v54 = vsel %vm1157_vm5, %v1167_v45, %v3207_v18 }
 0x77f   :  { %v1176_v55 = vsel %vm1157_vm5, %v1166_v46, %v3208_v19  ;;  %v1536_v56 = vmul.f32 %v1177_v54, %v1177_v54 }
 0x780   :  { %v2170_v9 = vpack.c.bf16 %v1177_v54, %v1176_v55  ;;  %v1535_v8 = vmul.f32 %v1176_v55, %v1176_v55 }
 0x781   :  { %v1550_v50 = vsel %vm186_vm1, %v1536_v56, 0.0 }
 0x782   :  { %v1548_v51 = vsel %vm186_vm1, %v1535_v8, 0.0  ;;  %2172 = vmatprep.subr.msk.bf16.mxu0 %vm2967_vm6, %v2170_v9 }
 0x783   :  { %v1549_v52 = vadd.f32 %v1548_v51, %v1547_v44  ;;  %2175 = vmatpush3.bf16.xpose.msk.msra.mxu0 %vm2967_vm6, %v2170_v9 }
 0x785   :  { %v1551_v16 = vadd.f32 %v1550_v50, %v1549_v52 }
 0x787   :  { %v1552_v18 = vrot.slane %v1551_v16, 4 }
 0x789   :  { %v1553_v17 = vadd.f32 %v1552_v18, %v1551_v16 }
 0x78a   :  { %2058 = vmatmul.mubr.msk.f32.vlgmr.msra.gmra.mrb[0].mxu0 %vm186_vm1, %v2858_v31 }
 0x78b   :  { %v1554_v19 = vrot.slane %v1553_v17, 2  ;;  %2060 = vmatprep.mubr.msk.f32.mxu0 %vm186_vm1, %v2875_v49 }
 0x78d   :  { %v1555_v39 = vadd.f32 %v1554_v19, %v1553_v17 }
 0x78e   :  { %2061 = vmatmul.mubr.msk.f32.gmra.mrb[2].mxu0 %vm186_vm1, %v2886_v53 }
 0x78f   :  { %v1556_v20 = vrot.slane %v1555_v39, 1  ;;  %2063 = vmatprep.mubr.msk.f32.mxu0 %vm186_vm1, %v2897_v11 }
 0x791   :  { %v1557_v61 = vadd.f32 %v1556_v20, %v1555_v39 }
 0x792   :  { %2064 = vmatmul.mubr.msk.f32.gmra.mrb[4].mxu0 %vm186_vm1, %v2908_v22 }
 0x793   :  { %2272 = vrsqrt.f32 %v1557_v61  ;;  %2066 = vmatprep.mubr.msk.f32.mxu0 %vm186_vm1, %v2919_v25  ;;  %vm1560_vm7 = vcmp.eq.f32.partialorder %v1557_v61, inf  ;;  %v1563_v13 = vand.u32 2147483648, %v1557_v61  ;;  %vm1562_vm8 = vcmp.eq.f32.partialorder %v1557_v61, 0.0 }
 0x796   :  { %2067 = vmatmul.mubr.msk.f32.gmra.mrb[6].mxu0 %vm186_vm1, %v2930_v27 }
 0x79d   :  { %v2273_v10 = vpop.eup %2272 }
 0x79e   :  { %v1559_v12 = vmul.f32 %v2273_v10, %v1557_v61 }
 0x7a0   :  { %v1561_v14 = vsel %vm1560_vm7, %v1557_v61, %v1559_v12 }
 0x7a1   :  { %v1564_v26 = vsel %vm1562_vm8, %v1563_v13, %v1561_v14 }
 0x7a2   :  { %v1565_v57 = vmax.f32 %v1564_v26, 1e-12 }
 0x7a4   :  { %2274 = vrcp.f32 %v1565_v57 }
 0x7ae   :  { %v2275_v30 = vpop.eup %2274 }
 0x7af   :  { %v1573_v58 = vmul.f32 %v2275_v30, %v1176_v55  ;;  %v1574_v29 = vmul.f32 %v2275_v30, %v1177_v54  ;;  %v1567_v34 = vmul.f32 %v2275_v30, %v2963_v60  ;;  %v1568_v28 = vmul.f32 %v2275_v30, %v2958_v59 }
 0x7b0   :  { %v1569_v32 = vmul.f32 %v2275_v30, %v2989_v23  ;;  %v1570_v38 = vmul.f32 %v2275_v30, %v2984_v21  ;;  %v1571_v40 = vmul.f32 %v2275_v30, %v1174_v35  ;;  %v1572_v41 = vmul.f32 %v2275_v30, %v1175_v33 }
 0x7b1   :  { %v2186_v42 = vpack.c.bf16 %v1574_v29, %v1573_v58  ;;  %1575 = vxpose.xlu1.b32.start [1/8] (short) (narrow) %v1567_v34, 8  ;;  %v2177_v43 = vpack.c.bf16 %v1568_v28, %v1567_v34 }
 0x7b2   :  { %v2180_v36 = vpack.c.bf16 %v1570_v38, %v1569_v32  ;;  %v2183_v47 = vpack.c.bf16 %v1572_v41, %v1571_v40 }
 0x7b3   :  { %2178 = vmatpush3.bf16.msra.mxu1 %v2177_v43 }
 0x7b4   :  { %2179 = vmatprep.subr.bf16.mxu1 %v2416_v48 }
 0x7b5   :  { %1576 = vxpose.xlu1.b32.cont [2/8] (short) (narrow) %v1568_v28, 8 }
 0x7b7   :  { %2181 = vmatpush3.bf16.msra.mxu1 %v2180_v36 }
 0x7b8   :  { %2182 = vmatprep.subr.bf16.mxu1 %v2416_v48 }
 0x7b9   :  { %1577 = vxpose.xlu1.b32.cont [3/8] (short) (narrow) %v1569_v32, 8 }
 0x7bb   :  { %2184 = vmatpush3.bf16.msra.mxu1 %v2183_v47 }
 0x7bc   :  { %2185 = vmatprep.subr.bf16.mxu1 %v2416_v48 }
 0x7bd   :  { %1578 = vxpose.xlu1.b32.cont [4/8] (short) (narrow) %v1570_v38, 8 }
 0x7bf   :  { %2187 = vmatpush3.bf16.msra.mxu1 %v2186_v42 }
 0x7c1   :  { %1579 = vxpose.xlu1.b32.cont [5/8] (short) (narrow) %v1571_v40, 8 }
 0x7c5   :  { %1580 = vxpose.xlu1.b32.cont [6/8] (short) (narrow) %v1572_v41, 8 }
 0x7c9   :  { %1581 = vxpose.xlu1.b32.cont [7/8] (short) (narrow) %v1573_v58, 8 }
 0x7cd   :  { %1582 = vxpose.xlu1.b32.end [8/8] (short) (narrow) %v1574_v29, 8 }
 0x831   :  { %v1591_v59 = vpop.trf.xlu1 }
 0x832   :  { %2086 = vmatmul.mubr.msk.f32.vlgmr.msra.gmra.mrb[16].mxu1 %vm48_vm0, %v1591_v59 }
 0x85d   :  { %v2059_v60 = vpop.f32.mrb[0].mxu0 }
 0x85e   :  { %v1342_v21 = vsub.f32 %v2463_v1, %v2059_v60  ;;  %v1302_v23 = vpop.f32.mrb[1].mxu0 }
 0x85f   :  { %v1341_v33 = vsub.f32 %v2458_v0, %v1302_v23 }
 0x860   :  { %v1350_v35 = vmul.f32 %v1342_v21, %v1342_v21 }
 0x861   :  { %v2062_v37 = vpop.f32.mrb[2].mxu0  ;;  %v1349_v62 = vmul.f32 %v1341_v33, %v1341_v33 }
 0x862   :  { %v1344_v48 = vsub.f32 %v2473_v3, %v2062_v37  ;;  %v1312_v45 = vpop.f32.mrb[3].mxu0  ;;  %v1360_v63 = vsel %vm48_vm0, %v1350_v35, 0.0 }
 0x863   :  { %v1343_v46 = vsub.f32 %v2468_v2, %v1312_v45  ;;  %1361 = vadd.xlane.f32.xlu1 %v1360_v63  ;;  %v1357_v44 = vsel %vm48_vm0, %v1349_v62, 0.0 }
 0x864   :  { %1358 = vadd.xlane.f32.xlu0 %v1357_v44  ;;  %v1352_v54 = vmul.f32 %v1344_v48, %v1344_v48 }
 0x865   :  { %v2065_v55 = vpop.f32.mrb[4].mxu0  ;;  %v1351_v1 = vmul.f32 %v1343_v46, %v1343_v46 }
 0x866   :  { %v1346_v56 = vsub.f32 %v2483_v5, %v2065_v55  ;;  %v1322_v0 = vpop.f32.mrb[5].mxu0  ;;  %v1366_v9 = vsel %vm48_vm0, %v1352_v54, 0.0 }
 0x867   :  { %v1345_v8 = vsub.f32 %v2478_v4, %v1322_v0  ;;  %1367 = vadd.xlane.f32.xlu1 %v1366_v9  ;;  %v1363_v3 = vsel %vm48_vm0, %v1351_v1, 0.0 }
 0x868   :  { %1364 = vadd.xlane.f32.xlu0 %v1363_v3  ;;  %v1354_v51 = vmul.f32 %v1346_v56, %v1346_v56 }
 0x869   :  { %v2068_v2 = vpop.f32.mrb[6].mxu0  ;;  %v1353_v52 = vmul.f32 %v1345_v8, %v1345_v8 }
 0x86a   :  { %v1348_v50 = vsub.f32 %v2493_v7, %v2068_v2  ;;  %v1332_v16 = vpop.f32.mrb[7].mxu0  ;;  %v1372_v18 = vsel %vm48_vm0, %v1354_v51, 0.0 }
 0x86b   :  { %v1347_v17 = vsub.f32 %v2488_v6, %v1332_v16  ;;  %1373 = vadd.xlane.f32.xlu1 %v1372_v18  ;;  %v1369_v5 = vsel %vm48_vm0, %v1353_v52, 0.0 }
 0x86c   :  { %1370 = vadd.xlane.f32.xlu0 %v1369_v5  ;;  %v1356_v19 = vmul.f32 %v1348_v50, %v1348_v50 }
 0x86d   :  { %v1355_v4 = vmul.f32 %v1347_v17, %v1347_v17 }
 0x86e   :  { %v1378_v39 = vsel %vm48_vm0, %v1356_v19, 0.0 }
 0x86f   :  { %1379 = vadd.xlane.f32.xlu1 %v1378_v39  ;;  %v1375_v20 = vsel %vm48_vm0, %v1355_v4, 0.0 }
 0x870   :  { %1376 = vadd.xlane.f32.xlu0 %v1375_v20 }
 0x871   :  { %2303 = shalt.err (!%p2300_p5)
}
 0x872   :  { %s2304_s24 = scalar_lea.hbm %s3197_s3, 16 }
 0x873   :  { %p2305_p6 = scmp.ne.s32.totalorder %s3197_s3, %s2304_s24  ;;  %p2308_p7 = scmp.lt.u32.totalorder %s2304_s24, %s3197_s3 }
 0x875   :  { %p2310_p8 = pnand %p2308_p7, %p2305_p6 }
 0x877   :  { %2313 = shalt.err (!%p2310_p8)
}
 0x878   :  { %1693 = dma.vmem_to_hbm [thread:$0]  %s1691_s20, 16, %s3197_s3, [#allocation3]  }
 0x879   :  { %s2419_s3 = smov [#allocation4]  }
 0x87a   :  { %s1704_s30 = sshll.u32 %s2419_s3, 4  ;;  %s1705_s30 = int_to_ptr.vmem [resolvable:$true] %s1704_s30 }
 0x87b   :  { %s2314_s7 = scalar_lea.vmem %s1705_s30, 128  ;;  %p2319_p10 = scmp.lt.s32.totalorder %s1705_s30, %s1705_s30 }
 0x87c   :  { %p2315_p9 = scmp.ne.s32.totalorder %s1705_s30, %s2314_s7  ;;  %p2320_p11 = scmp.lt.s32.totalorder %s2314_s7, %s2314_s7 }
 0x87e   :  { %p2321_p12 = por %p2320_p11, %p2319_p10 }
 0x880   :  { %p2322_p13 = pnand %p2321_p12, %p2315_p9 }
 0x8f0   :  { %v1362_v6 = vpop.xlane.xlu1 %1361 }
 0x8f1   :  { %2276 = vrsqrt.f32 %v1362_v6  ;;  %v1359_v7 = vpop.xlane.xlu0 %1358  ;;  %vm1390_vm0 = vcmp.eq.f32.partialorder %v1362_v6, inf  ;;  %vm1392_vm9 = vcmp.eq.f32.partialorder %v1362_v6, 0.0  ;;  %v1393_v26 = vand.u32 2147483648, %v1362_v6 }
 0x8f2   :  { %2278 = vrsqrt.f32 %v1359_v7  ;;  %vm1383_vm10 = vcmp.eq.f32.partialorder %v1359_v7, inf  ;;  %vm1385_vm11 = vcmp.eq.f32.partialorder %v1359_v7, 0.0  ;;  %v1386_v58 = vand.u32 2147483648, %v1359_v7 }
 0x8f4   :  { %v1368_v61 = vpop.xlane.xlu1 %1367 }
 0x8f5   :  { %2280 = vrsqrt.f32 %v1368_v61  ;;  %v1365_v10 = vpop.xlane.xlu0 %1364  ;;  %vm1404_vm12 = vcmp.eq.f32.partialorder %v1368_v61, inf  ;;  %vm1406_vm13 = vcmp.eq.f32.partialorder %v1368_v61, 0.0  ;;  %v1407_v32 = vand.u32 2147483648, %v1368_v61 }
 0x8f6   :  { %2282 = vrsqrt.f32 %v1365_v10  ;;  %vm1397_vm14 = vcmp.eq.f32.partialorder %v1365_v10, inf  ;;  %vm1399_vm15 = vcmp.eq.f32.partialorder %v1365_v10, 0.0  ;;  %v1400_v43 = vand.u32 2147483648, %v1365_v10 }
 0x8f8   :  { %v3079_v12 = vpop.xlane.xlu1 %1373 }
 0x8f9   :  { %2284 = vrsqrt.f32 %v3079_v12  ;;  %v3082_v13 = vpop.xlane.xlu0 %1370  ;;  %v1421_v36 = vand.u32 2147483648, %v3079_v12  ;;  %vm1418_vm4 = vcmp.eq.f32.partialorder %v3079_v12, inf  ;;  %vm1420_vm7 = vcmp.eq.f32.partialorder %v3079_v12, 0.0 }
 0x8fa   :  { %2286 = vrsqrt.f32 %v3082_v13  ;;  %vm1411_vm5 = vcmp.eq.f32.partialorder %v3082_v13, inf  ;;  %v1414_v21 = vand.u32 2147483648, %v3082_v13  ;;  %vm1413_vm8 = vcmp.eq.f32.partialorder %v3082_v13, 0.0 }
 0x8fb   :  { %v2277_v14 = vpop.eup %2276 }
 0x8fc   :  { %v2279_v57 = vpop.eup %2278  ;;  %v1389_v30 = vmul.f32 %v2277_v14, %v1362_v6  ;;  %v3085_v29 = vpop.xlane.xlu1 %1379 }
 0x8fd   :  { %v1382_v34 = vmul.f32 %v2279_v57, %v1359_v7  ;;  %2288 = vrsqrt.f32 %v3085_v29  ;;  %v3088_v38 = vpop.xlane.xlu0 %1376  ;;  %v1435_v50 = vand.u32 2147483648, %v3085_v29 }
 0x8fe   :  { %v1391_v28 = vsel %vm1390_vm0, %v1362_v6, %v1389_v30  ;;  %2290 = vrsqrt.f32 %v3088_v38  ;;  %vm1432_vm0 = vcmp.eq.f32.partialorder %v3085_v29, inf }
 0x8ff   :  { %v2281_v40 = vpop.eup %2280  ;;  %v1394_v41 = vsel %vm1392_vm9, %v1393_v26, %v1391_v28  ;;  %v1384_v42 = vsel %vm1383_vm10, %v1359_v7, %v1382_v34 }
 0x900   :  { %v2283_v47 = vpop.eup %2282  ;;  %vm1438_vm2 = vcmp.gt.f32.partialorder %v1394_v41, 0.6  ;;  %v1387_v59 = vsel %vm1385_vm11, %v1386_v58, %v1384_v42  ;;  %v1403_v60 = vmul.f32 %v2281_v40, %v1368_v61  ;;  %vm1434_vm11 = vcmp.eq.f32.partialorder %v3085_v29, 0.0 }
 0x901   :  { %v1832_v23 = vsel %vm1438_vm2, 1.0, %v2414_v15  ;;  %vm1437_vm6 = vcmp.gt.f32.partialorder %v1387_v59, 0.6  ;;  %v1396_v33 = vmul.f32 %v2283_v47, %v1365_v10 }
 0x902   :  { %v1462_v35 = vmul.f32 %v1832_v23, %v1394_v41  ;;  %v1500_v37 = vmul.f32 %v1832_v23, %v2858_v31  ;;  %v1831_v62 = vsel %vm1437_vm6, 1.0, %v2414_v15  ;;  %v1405_v48 = vsel %vm1404_vm12, %v1368_v61, %v1403_v60 }
 0x903   :  { %v2285_v45 = vpop.eup %2284  ;;  %v1461_v63 = vmul.f32 %v1831_v62, %v1387_v59  ;;  %v1499_v46 = vmul.f32 %v1831_v62, %v2846_v24  ;;  %v1408_v44 = vsel %vm1406_vm13, %v1407_v32, %v1405_v48  ;;  %v1398_v54 = vsel %vm1397_vm14, %v1365_v10, %v1396_v33 }
 0x904   :  { %v2287_v55 = vpop.eup %2286  ;;  %v1470_v1 = vmul.f32 %v2858_v31, %v1462_v35  ;;  %v1508_v56 = vsel %vm186_vm1, %v1500_v37, 0.0  ;;  %vm1440_vm9 = vcmp.gt.f32.partialorder %v1408_v44, 0.6  ;;  %v1401_v0 = vsel %vm1399_vm15, %v1400_v43, %v1398_v54 }
 0x905   :  { %v1469_v9 = vmul.f32 %v2846_v24, %v1461_v63  ;;  %v1507_v8 = vsel %vm186_vm1, %v1499_v46, 0.0  ;;  %v1834_v3 = vsel %vm1440_vm9, 1.0, %v2414_v15  ;;  %vm1439_vm10 = vcmp.gt.f32.partialorder %v1401_v0, 0.6  ;;  %v1676_v51 = vpop.f32.mrb[16].mxu1 }
 0x906   :  { %v1478_v2 = vsel %vm186_vm1, %v1470_v1, 0.0  ;;  %v1464_v52 = vmul.f32 %v1834_v3, %v1408_v44  ;;  %v1502_v31 = vmul.f32 %v1834_v3, %v2886_v53  ;;  %v2087_v16 = vpop.f32.mrb[17].mxu1  ;;  %v1833_v24 = vsel %vm1439_vm10, 1.0, %v2414_v15 }
 0x907   :  { %v2289_v18 = vpop.eup %2288  ;;  %v1477_v17 = vsel %vm186_vm1, %v1469_v9, 0.0  ;;  %v1417_v5 = vmul.f32 %v2285_v45, %v3079_v12  ;;  %v1410_v19 = vmul.f32 %v2287_v55, %v3082_v13  ;;  %vm1425_vm12 = vcmp.eq.f32.partialorder %v3088_v38, inf }
 0x908   :  { %v1479_v4 = vadd.f32 %v1478_v2, %v1477_v17  ;;  %v1509_v39 = vadd.f32 %v1508_v56, %v1507_v8  ;;  %v1472_v20 = vmul.f32 %v2886_v53, %v1464_v52  ;;  %v1463_v6 = vmul.f32 %v1833_v24, %v1401_v0  ;;  %v2291_v58 = vpop.eup %2290 }
 0x909   :  { %v1501_v7 = vmul.f32 %v1833_v24, %v2875_v49  ;;  %v1419_v61 = vsel %vm1418_vm4, %v3079_v12, %v1417_v5  ;;  %v1412_v10 = vsel %vm1411_vm5, %v3082_v13, %v1410_v19  ;;  %v1431_v14 = vmul.f32 %v2289_v18, %v3085_v29 }
 0x90a   :  { %vm1427_vm13 = vcmp.eq.f32.partialorder %v3088_v38, 0.0  ;;  %v1512_v26 = vsel %vm186_vm1, %v1502_v31, 0.0  ;;  %v1471_v57 = vmul.f32 %v2875_v49, %v1463_v6  ;;  %v1422_v53 = vsel %vm1420_vm7, %v1421_v36, %v1419_v61 }
 0x90b   :  { %v1415_v30 = vsel %vm1413_vm8, %v1414_v21, %v1412_v10  ;;  %v1510_v34 = vsel %vm186_vm1, %v1501_v7, 0.0  ;;  %vm1442_vm14 = vcmp.gt.f32.partialorder %v1422_v53, 0.6  ;;  %v1433_v28 = vsel %vm1432_vm0, %v3085_v29, %v1431_v14 }
 0x90c   :  { %vm1441_vm15 = vcmp.gt.f32.partialorder %v1415_v30, 0.6  ;;  %v1480_v32 = vsel %vm186_vm1, %v1471_v57, 0.0  ;;  %v1511_v40 = vadd.f32 %v1510_v34, %v1509_v39  ;;  %v1836_v49 = vsel %vm1442_vm14, 1.0, %v2414_v15 }
 0x90d   :  { %v1835_v12 = vsel %vm1441_vm15, 1.0, %v2414_v15  ;;  %v1482_v41 = vsel %vm186_vm1, %v1472_v20, 0.0  ;;  %v1481_v13 = vadd.f32 %v1480_v32, %v1479_v4  ;;  %v1466_v42 = vmul.f32 %v1836_v49, %v1422_v53 }
 0x90e   :  { %v1465_v43 = vmul.f32 %v1835_v12, %v1415_v30  ;;  %v1513_v36 = vadd.f32 %v1512_v26, %v1511_v40  ;;  %v1503_v47 = vmul.f32 %v1835_v12, %v2897_v11  ;;  %v1436_v59 = vsel %vm1434_vm11, %v1435_v50, %v1433_v28 }
 0x90f   :  { %v1424_v60 = vmul.f32 %v2291_v58, %v3088_v38  ;;  %v1504_v21 = vmul.f32 %v1836_v49, %v2908_v22  ;;  %v1483_v23 = vadd.f32 %v1482_v41, %v1481_v13  ;;  %v1428_v35 = vand.u32 2147483648, %v3088_v38 }
 0x910   :  { %v1473_v33 = vmul.f32 %v2897_v11, %v1465_v43  ;;  %v1514_v37 = vsel %vm186_vm1, %v1503_v47, 0.0  ;;  %vm1444_vm2 = vcmp.gt.f32.partialorder %v1436_v59, 0.6  ;;  %v1680_v48 = vsub.f32 1.0, %v1676_v51 }
 0x911   :  { %v1426_v62 = vsel %vm1425_vm12, %v3088_v38, %v1424_v60  ;;  %v1474_v29 = vmul.f32 %v2908_v22, %v1466_v42  ;;  %v1515_v63 = vadd.f32 %v1514_v37, %v1513_v36  ;;  %v1838_v46 = vsel %vm1444_vm2, 1.0, %v2414_v15 }
 0x912   :  { %v1484_v45 = vsel %vm186_vm1, %v1473_v33, 0.0  ;;  %v1429_v11 = vsel %vm1427_vm13, %v1428_v35, %v1426_v62  ;;  %1681 = vst.msk [vmem:[#allocation4] sm:$0xff] %vm186_vm1, %v1680_v48  ;;  %v1516_v54 = vsel %vm186_vm1, %v1504_v21, 0.0  ;;  %v1468_v55 = vmul.f32 %v1838_v46, %v1436_v59 }
 0x913   :  { %v1485_v44 = vadd.f32 %v1484_v45, %v1483_v23  ;;  %vm1443_vm4 = vcmp.gt.f32.partialorder %v1429_v11, 0.6 }
 0x914   :  { %2325 = shalt.err (!%p2322_p13)
}
 0x915   :  { %s2326_s10 = scalar_lea.hbm %s3200_s6, 128 }
 0x916   :  { %p2327_p0 = scmp.ne.s32.totalorder %s3200_s6, %s2326_s10  ;;  %p2330_p1 = scmp.lt.u32.totalorder %s2326_s10, %s3200_s6 }
 0x918   :  { %p2332_p2 = pnand %p2330_p1, %p2327_p0 }
 0x91a   :  { %2335 = shalt.err (!%p2332_p2)
}
 0x91b   :  { %1707 = dma.vmem_to_hbm [thread:$0]  %s1705_s30, 128, %s3200_s6, [#allocation5]   ;;  %v1837_v22 = vsel %vm1443_vm4, 1.0, %v2414_v15  ;;  %v1517_v38 = vadd.f32 %v1516_v54, %v1515_v63  ;;  %v1486_v1 = vsel %vm186_vm1, %v1474_v29, 0.0  ;;  %v1506_v56 = vmul.f32 %v1838_v46, %v2930_v27 }
 0x91c   :  { %v1467_v0 = vmul.f32 %v1837_v22, %v1429_v11  ;;  %v1505_v9 = vmul.f32 %v1837_v22, %v2919_v25  ;;  %v1487_v8 = vadd.f32 %v1486_v1, %v1485_v44  ;;  %v1476_v3 = vmul.f32 %v2930_v27, %v1468_v55 }
 0x91d   :  { %v1520_v15 = vsel %vm186_vm1, %v1506_v56, 0.0 }
 0x91e   :  { %v1475_v51 = vmul.f32 %v2919_v25, %v1467_v0  ;;  %v1518_v2 = vsel %vm186_vm1, %v1505_v9, 0.0  ;;  %v1490_v18 = vsel %vm186_vm1, %v1476_v3, 0.0 }
 0x91f   :  { %v1519_v52 = vadd.f32 %v1518_v2, %v1517_v38 }
 0x920   :  { %v1488_v31 = vsel %vm186_vm1, %v1475_v51, 0.0 }
 0x921   :  { %v1489_v50 = vadd.f32 %v1488_v31, %v1487_v8  ;;  %v1521_v16 = vadd.f32 %v1520_v15, %v1519_v52 }
 0x923   :  { %v1491_v17 = vadd.f32 %v1490_v18, %v1489_v50  ;;  %v1522_v24 = vrot.slane %v1521_v16, 4 }
 0x925   :  { %v1492_v5 = vrot.slane %v1491_v17, 4  ;;  %v1523_v19 = vadd.f32 %v1522_v24, %v1521_v16 }
 0x927   :  { %v1493_v4 = vadd.f32 %v1492_v5, %v1491_v17  ;;  %v1524_v39 = vrot.slane %v1523_v19, 2 }
 0x929   :  { %v1494_v27 = vrot.slane %v1493_v4, 2  ;;  %v1525_v20 = vadd.f32 %v1524_v39, %v1523_v19 }
 0x92b   :  { %v1495_v25 = vadd.f32 %v1494_v27, %v1493_v4  ;;  %v1526_v6 = vrot.slane %v1525_v20, 1 }
 0x92d   :  { %v1496_v7 = vrot.slane %v1495_v25, 1  ;;  %v1527_v61 = vadd.f32 %v1526_v6, %v1525_v20 }
 0x92f   :  { %v1497_v10 = vadd.f32 %v1496_v7, %v1495_v25  ;;  %1528 = vst.msk [vmem:[%s3199_s5] sm:$0x1] %vm1186_vm3, %v1527_v61 }
 0x931   :  { %1498 = vst.msk [vmem:[%s3198_s4] sm:$0x1] %vm1186_vm3, %v1497_v10 }
 0x932   :  { %2372 = dma.done.wait [#allocation3], 16  }
 0x933   :  { %2373 = vsyncadd [#allocation3], 4294967280 }
 0x934   :  { %2374 = dma.done.wait [#allocation5], 128  }
 0x935   :  { %2375 = vsyncadd [#allocation5], 4294967168 }
 0x936   :  { %1720 = vsyncpa [#allocation3], 1 }
 0x937   :  { %1721 = vsyncpa [#allocation5], 1 }

</bundles_post_ra>
